<compile_context>
chip_gen: v6e
topology: v6e:2x2x1
jax: 0.10.0
libtpu: 0.0.40
codegen_flags: <defaults>
</compile_context>

<pallas_src>
import functools

import jax
import jax.numpy as jnp
from jax.experimental import pallas as pl
from jax.experimental.pallas import tpu as pltpu


def _round_up(x, m):
    return (x + m - 1) // m * m


def vae_kernel(
    x_ref, eps_ref,
    w1_ref, b1_ref,           # enc hidden
    wmv_ref, bmv_ref,         # enc packed [mu | logvar] head
    wd1_ref, bd1_ref,         # dec hidden
    wd2_ref, bd2_ref,         # dec output
    pred_ref, zmv_ref,        # outputs: reconstruction, packed [mu | logvar]
    *, p_half,
):
    x = x_ref[...]

    # ----- encoder -----
    h = jnp.dot(x, w1_ref[...], preferred_element_type=jnp.float32) + b1_ref[...]
    h = jnp.maximum(h, 0.0)

    # fused mu/logvar head: single MXU matmul, lane-dense [TB, 2*p_half] result
    zmv = jnp.dot(h, wmv_ref[...], preferred_element_type=jnp.float32) + bmv_ref[...]
    zmv_ref[...] = zmv

    z_mu = zmv[:, :p_half]            # static, half-slab slices
    z_var = zmv[:, p_half:]

    # ----- reparameterization -----
    # eps lanes >= D_lat are zero; z_mu/z_var pad lanes are exactly zero (zero
    # weight/bias padding), so x_sample pad lanes are zero and wd1 pad rows are
    # zero -> no contamination of the decoder matmul.
    std = jnp.exp(z_var * 0.5)
    x_sample = eps_ref[...] * std + z_mu

    # ----- decoder -----
    hd = jnp.dot(x_sample, wd1_ref[...], preferred_element_type=jnp.float32) + bd1_ref[...]
    hd = jnp.maximum(hd, 0.0)
    logits = jnp.dot(hd, wd2_ref[...], preferred_element_type=jnp.float32) + bd2_ref[...]
    # exact sigmoid: one tanh EUP push (no approximate-reciprocal error)
    pred_ref[...] = 0.5 * (jnp.tanh(0.5 * logits) + 1.0)


def vae_forward(x, eps, params, *, tb=512):
    """x: [B, D_in], eps: [B, D_lat]; params: dict of unpadded weights/biases."""
    B, D_in = x.shape
    D_lat = eps.shape[1]
    D_hid = params["w1"].shape[1]

    f32 = jnp.float32

    # Hidden dim padded to a lane multiple (weights only, one-time cost).
    D_hid_p = _round_up(D_hid, 128)
    # Each latent head padded to P_half so [mu | logvar] packs into a slab whose
    # total width (2*P_half) is a multiple of 128 -> lane-dense zmv output.
    P_half = _round_up(D_lat, 64)
    D_lat2 = 2 * P_half

    # Batch tiling: big tiles for HBM roofline / MXU fill; >=2 tiles so the
    # "parallel" axis can shard across the 2 TensorCores on v7x for large B.
    TB = min(tb, _round_up(B, 8))
    if B >= 512 and pl.cdiv(B, TB) < 2:
        TB = _round_up(pl.cdiv(B, 2), 8)
    n_tiles = pl.cdiv(B, TB)
    B_p = n_tiles * TB

    def pad2(a, rows, cols):
        a = jnp.asarray(a, f32)
        return jnp.pad(a, ((0, rows - a.shape[0]), (0, cols - a.shape[1])))

    # x keeps its natural feature width (block last dim == full array dim is
    # legal), avoiding a batch-sized pad + post-kernel slice HBM round trip.
    x_p = x.astype(f32) if B_p == B else pad2(x, B_p, D_in)
    eps_p = pad2(eps, B_p, P_half)

    w1 = pad2(params["w1"], D_in, D_hid_p)
    b1 = pad2(params["b1"], 1, D_hid_p)

    # Packed mu / logvar heads: [D_hid_p, 2*P_half]; each head keeps its own
    # P_half-lane half so in-kernel splitting is a static slice.
    wmv = jnp.concatenate(
        [pad2(params["wmu"], D_hid_p, P_half), pad2(params["wvar"], D_hid_p, P_half)],
        axis=1)
    bmv = jnp.concatenate(
        [pad2(params["bmu"], 1, P_half), pad2(params["bvar"], 1, P_half)], axis=1)

    wd1 = pad2(params["wd1"], P_half, D_hid_p)
    bd1 = pad2(params["bd1"], 1, D_hid_p)
    wd2 = pad2(params["wd2"], D_hid_p, D_in)
    bd2 = pad2(params["bd2"], 1, D_in)

    weights = (w1, b1, wmv, bmv, wd1, bd1, wd2, bd2)

    # Real VMEM need: resident weights (double-buffered by the pipeline) plus
    # double-buffered activation tiles (x, eps in; pred, zmv out).
    weight_bytes = sum(int(w.size) for w in weights) * 4
    act_bytes = TB * (D_in + P_half + D_in + D_lat2) * 4
    vmem_limit = int(min(32 << 20, max(16 << 20, 2 * (weight_bytes + act_bytes))))

    batch_spec = lambda cols: pl.BlockSpec((TB, cols), lambda i: (i, 0))
    resident = lambda a: pl.BlockSpec(a.shape, lambda i: (0, 0))

    out_shapes = (
        jax.ShapeDtypeStruct((B_p, D_in), f32),     # reconstruction
        jax.ShapeDtypeStruct((B_p, D_lat2), f32),   # packed [mu | logvar]
    )

    pred_p, zmv_p = pl.pallas_call(
        functools.partial(vae_kernel, p_half=P_half),
        out_shape=out_shapes,
        grid=(n_tiles,),
        in_specs=[
            batch_spec(D_in),        # x
            batch_spec(P_half),      # eps
            resident(w1), resident(b1),
            resident(wmv), resident(bmv),
            resident(wd1), resident(bd1),
            resident(wd2), resident(bd2),
        ],
        out_specs=[
            batch_spec(D_in),
            batch_spec(D_lat2),
        ],
        compiler_params=pltpu.CompilerParams(
            dimension_semantics=("parallel",),   # megacore: TCs split batch tiles
            vmem_limit_bytes=vmem_limit,
        ),
    )(x_p, eps_p, *weights)

    pred = pred_p if B_p == B else pred_p[:B]
    z_mu = zmv_p[:B, :D_lat]
    z_var = zmv_p[:B, P_half:P_half + D_lat]
    return pred, z_mu, z_var


def make_params(key, d_in, d_hid, d_lat):
    ks = jax.random.split(key, 6)
    scale = 0.05
    return {
        "w1":  scale * jax.random.normal(ks[0], (d_in, d_hid), jnp.float32),
        "b1":  jnp.zeros((1, d_hid), jnp.float32),
        "wmu": scale * jax.random.normal(ks[1], (d_hid, d_lat), jnp.float32),
        "bmu": jnp.zeros((1, d_lat), jnp.float32),
        "wvar": scale * jax.random.normal(ks[2], (d_hid, d_lat), jnp.float32),
        "bvar": jnp.zeros((1, d_lat), jnp.float32),
        "wd1": scale * jax.random.normal(ks[3], (d_lat, d_hid), jnp.float32),
        "bd1": jnp.zeros((1, d_hid), jnp.float32),
        "wd2": scale * jax.random.normal(ks[4], (d_hid, d_in), jnp.float32),
        "bd2": jnp.zeros((1, d_in), jnp.float32),
    }


def vae_reference(x, eps, p):
    h = jnp.maximum(x @ p["w1"] + p["b1"], 0.0)
    z_mu = h @ p["wmu"] + p["bmu"]
    z_var = h @ p["wvar"] + p["bvar"]
    std = jnp.exp(z_var / 2.0)
    x_s = eps * std + z_mu
    hd = jnp.maximum(x_s @ p["wd1"] + p["bd1"], 0.0)
    pred = jax.nn.sigmoid(hd @ p["wd2"] + p["bd2"])
    return pred, z_mu, z_var


if __name__ == "__main__":
    # Keep kernel matmuls and the pure-JAX reference on identical f32 precision.
    jax.config.update("jax_default_matmul_precision", "highest")

    key = jax.random.PRNGKey(0)
    k_x, k_eps, k_p = jax.random.split(key, 3)

    B, D_in, D_hid, D_lat = 8, 64, 32, 16

    x = jax.random.normal(k_x, (B, D_in), jnp.float32)
    # TODO(synk): torch.randn_like inside forward has no testable in-kernel
    # equivalent; eps is an explicit deterministic input (same math as
    # eps.mul(std).add_(z_mu)).
    eps = jax.random.normal(k_eps, (B, D_lat), jnp.float32)
    params = make_params(k_p, D_in, D_hid, D_lat)

    pred, z_mu, z_var = jax.block_until_ready(vae_forward(x, eps, params))

    pred_r, z_mu_r, z_var_r = vae_reference(x, eps, params)
    assert jnp.allclose(z_mu, z_mu_r, atol=1e-5, rtol=1e-5)
    assert jnp.allclose(z_var, z_var_r, atol=1e-5, rtol=1e-5)
    assert jnp.allclose(pred, pred_r, atol=1e-5, rtol=1e-5)

    print("KERNEL_OK")
</pallas_src>

<mosaic_0001>
module attributes {stable_mosaic.version = 11 : i64} {
  func.func @vae_kernel(%arg0: i32, %arg1: memref<8x64xf32, #tpu.memory_space<vmem>>, %arg2: memref<8x64xf32, #tpu.memory_space<vmem>>, %arg3: memref<64x128xf32, #tpu.memory_space<vmem>>, %arg4: memref<1x128xf32, #tpu.memory_space<vmem>>, %arg5: memref<128x128xf32, #tpu.memory_space<vmem>>, %arg6: memref<1x128xf32, #tpu.memory_space<vmem>>, %arg7: memref<64x128xf32, #tpu.memory_space<vmem>>, %arg8: memref<1x128xf32, #tpu.memory_space<vmem>>, %arg9: memref<128x64xf32, #tpu.memory_space<vmem>>, %arg10: memref<1x64xf32, #tpu.memory_space<vmem>>, %arg11: memref<8x64xf32, #tpu.memory_space<vmem>>, %arg12: memref<8x128xf32, #tpu.memory_space<vmem>>) attributes {dimension_semantics = [#tpu.dimension_semantics<parallel>], iteration_bounds = array<i64: 1>, scalar_prefetch = 0 : i64, scratch_operands = 0 : i64, tpu.core_type = #tpu.core_type<tc>, window_params = [{transform_indices = @transform_0, window_bounds = array<i64: 8, 64>}, {transform_indices = @transform_1, window_bounds = array<i64: 8, 64>}, {pipeline_mode = #tpu.pipeline_mode<synchronous>, transform_indices = @transform_2, window_bounds = array<i64: 64, 128>}, {pipeline_mode = #tpu.pipeline_mode<synchronous>, transform_indices = @transform_3, window_bounds = array<i64: 1, 128>}, {pipeline_mode = #tpu.pipeline_mode<synchronous>, transform_indices = @transform_4, window_bounds = array<i64: 128, 128>}, {pipeline_mode = #tpu.pipeline_mode<synchronous>, transform_indices = @transform_5, window_bounds = array<i64: 1, 128>}, {pipeline_mode = #tpu.pipeline_mode<synchronous>, transform_indices = @transform_6, window_bounds = array<i64: 64, 128>}, {pipeline_mode = #tpu.pipeline_mode<synchronous>, transform_indices = @transform_7, window_bounds = array<i64: 1, 128>}, {pipeline_mode = #tpu.pipeline_mode<synchronous>, transform_indices = @transform_8, window_bounds = array<i64: 128, 64>}, {pipeline_mode = #tpu.pipeline_mode<synchronous>, transform_indices = @transform_9, window_bounds = array<i64: 1, 64>}, {transform_indices = @transform_10, window_bounds = array<i64: 8, 64>}, {transform_indices = @transform_11, window_bounds = array<i64: 8, 128>}]} {
    %c0 = arith.constant 0 : index
    %c0_0 = arith.constant 0 : index
    %0 = vector.load %arg1[%c0, %c0_0] : memref<8x64xf32, #tpu.memory_space<vmem>>, vector<8x64xf32>
    %c0_1 = arith.constant 0 : index
    %c0_2 = arith.constant 0 : index
    %1 = vector.load %arg3[%c0_1, %c0_2] : memref<64x128xf32, #tpu.memory_space<vmem>>, vector<64x128xf32>
    %cst = arith.constant dense<0.000000e+00> : vector<8x128xf32>
    %2 = tpu.matmul %0, %1, %cst {dimension_numbers = #tpu.dot_dimension_numbers<[1], [0], [0], [1], [0, 0, 1, 1], [], []>, precision = #tpu.contract_precision<fp32>} : vector<8x64xf32>, vector<64x128xf32>, vector<8x128xf32> -> vector<8x128xf32>
    %c0_3 = arith.constant 0 : index
    %c0_4 = arith.constant 0 : index
    %3 = vector.load %arg4[%c0_3, %c0_4] : memref<1x128xf32, #tpu.memory_space<vmem>>, vector<1x128xf32>
    %4 = vector.broadcast %3 : vector<1x128xf32> to vector<8x128xf32>
    %5 = arith.addf %2, %4 : vector<8x128xf32>
    %cst_5 = arith.constant 0.000000e+00 : f32
    %6 = vector.broadcast %cst_5 : f32 to vector<8x128xf32>
    %7 = arith.maximumf %5, %6 : vector<8x128xf32>
    %c0_6 = arith.constant 0 : index
    %c0_7 = arith.constant 0 : index
    %8 = vector.load %arg5[%c0_6, %c0_7] : memref<128x128xf32, #tpu.memory_space<vmem>>, vector<128x128xf32>
    %cst_8 = arith.constant dense<0.000000e+00> : vector<8x128xf32>
    %9 = tpu.matmul %7, %8, %cst_8 {dimension_numbers = #tpu.dot_dimension_numbers<[1], [0], [0], [1], [0, 0, 1, 1], [], []>, precision = #tpu.contract_precision<fp32>} : vector<8x128xf32>, vector<128x128xf32>, vector<8x128xf32> -> vector<8x128xf32>
    %c0_9 = arith.constant 0 : index
    %c0_10 = arith.constant 0 : index
    %10 = vector.load %arg6[%c0_9, %c0_10] : memref<1x128xf32, #tpu.memory_space<vmem>>, vector<1x128xf32>
    %11 = vector.broadcast %10 : vector<1x128xf32> to vector<8x128xf32>
    %12 = arith.addf %9, %11 : vector<8x128xf32>
    %c0_11 = arith.constant 0 : index
    %c0_12 = arith.constant 0 : index
    %13 = vector.load %arg12[%c0_11, %c0_12] : memref<8x128xf32, #tpu.memory_space<vmem>>, vector<8x128xf32>
    tpu.vector_store %arg12[%c0_11, %c0_12], %12 {strides = array<i32>} : memref<8x128xf32, #tpu.memory_space<vmem>>, vector<8x128xf32>,
    %14 = vector.extract_strided_slice %12 {offsets = [0, 0], sizes = [8, 64], strides = [1, 1]} : vector<8x128xf32> to vector<8x64xf32>
    %15 = vector.extract_strided_slice %12 {offsets = [0, 64], sizes = [8, 64], strides = [1, 1]} : vector<8x128xf32> to vector<8x64xf32>
    %cst_13 = arith.constant 5.000000e-01 : f32
    %16 = vector.broadcast %cst_13 : f32 to vector<8x64xf32>
    %17 = arith.mulf %15, %16 : vector<8x64xf32>
    %18 = math.exp %17 : vector<8x64xf32>
    %c0_14 = arith.constant 0 : index
    %c0_15 = arith.constant 0 : index
    %19 = vector.load %arg2[%c0_14, %c0_15] : memref<8x64xf32, #tpu.memory_space<vmem>>, vector<8x64xf32>
    %20 = arith.mulf %19, %18 : vector<8x64xf32>
    %21 = arith.addf %20, %14 : vector<8x64xf32>
    %c0_16 = arith.constant 0 : index
    %c0_17 = arith.constant 0 : index
    %22 = vector.load %arg7[%c0_16, %c0_17] : memref<64x128xf32, #tpu.memory_space<vmem>>, vector<64x128xf32>
    %cst_18 = arith.constant dense<0.000000e+00> : vector<8x128xf32>
    %23 = tpu.matmul %21, %22, %cst_18 {dimension_numbers = #tpu.dot_dimension_numbers<[1], [0], [0], [1], [0, 0, 1, 1], [], []>, precision = #tpu.contract_precision<fp32>} : vector<8x64xf32>, vector<64x128xf32>, vector<8x128xf32> -> vector<8x128xf32>
    %c0_19 = arith.constant 0 : index
    %c0_20 = arith.constant 0 : index
    %24 = vector.load %arg8[%c0_19, %c0_20] : memref<1x128xf32, #tpu.memory_space<vmem>>, vector<1x128xf32>
    %25 = vector.broadcast %24 : vector<1x128xf32> to vector<8x128xf32>
    %26 = arith.addf %23, %25 : vector<8x128xf32>
    %cst_21 = arith.constant 0.000000e+00 : f32
    %27 = vector.broadcast %cst_21 : f32 to vector<8x128xf32>
    %28 = arith.maximumf %26, %27 : vector<8x128xf32>
    %c0_22 = arith.constant 0 : index
    %c0_23 = arith.constant 0 : index
    %29 = vector.load %arg9[%c0_22, %c0_23] : memref<128x64xf32, #tpu.memory_space<vmem>>, vector<128x64xf32>
    %cst_24 = arith.constant dense<0.000000e+00> : vector<8x64xf32>
    %30 = tpu.matmul %28, %29, %cst_24 {dimension_numbers = #tpu.dot_dimension_numbers<[1], [0], [0], [1], [0, 0, 1, 1], [], []>, precision = #tpu.contract_precision<fp32>} : vector<8x128xf32>, vector<128x64xf32>, vector<8x64xf32> -> vector<8x64xf32>
    %c0_25 = arith.constant 0 : index
    %c0_26 = arith.constant 0 : index
    %31 = vector.load %arg10[%c0_25, %c0_26] : memref<1x64xf32, #tpu.memory_space<vmem>>, vector<1x64xf32>
    %32 = vector.broadcast %31 : vector<1x64xf32> to vector<8x64xf32>
    %33 = arith.addf %30, %32 : vector<8x64xf32>
    %cst_27 = arith.constant 5.000000e-01 : f32
    %34 = vector.broadcast %cst_27 : f32 to vector<8x64xf32>
    %35 = arith.mulf %34, %33 : vector<8x64xf32>
    %36 = math.tanh %35 : vector<8x64xf32>
    %cst_28 = arith.constant 1.000000e+00 : f32
    %37 = vector.broadcast %cst_28 : f32 to vector<8x64xf32>
    %38 = arith.addf %36, %37 : vector<8x64xf32>
    %cst_29 = arith.constant 5.000000e-01 : f32
    %39 = vector.broadcast %cst_29 : f32 to vector<8x64xf32>
    %40 = arith.mulf %39, %38 : vector<8x64xf32>
    %c0_30 = arith.constant 0 : index
    %c0_31 = arith.constant 0 : index
    %41 = vector.load %arg11[%c0_30, %c0_31] : memref<8x64xf32, #tpu.memory_space<vmem>>, vector<8x64xf32>
    tpu.vector_store %arg11[%c0_30, %c0_31], %40 {strides = array<i32>} : memref<8x64xf32, #tpu.memory_space<vmem>>, vector<8x64xf32>,
    return
  }
  func.func @transform_0(%arg0: i32) -> (i32, i32) {
    %c0_i32 = arith.constant 0 : i32
    %c0_i32_0 = arith.constant 0 : i32
    return %arg0, %c0_i32 : i32, i32
  }
  func.func @transform_1(%arg0: i32) -> (i32, i32) {
    %c0_i32 = arith.constant 0 : i32
    %c0_i32_0 = arith.constant 0 : i32
    return %arg0, %c0_i32 : i32, i32
  }
  func.func @transform_2(%arg0: i32) -> (i32, i32) {
    %c0_i32 = arith.constant 0 : i32
    %c0_i32_0 = arith.constant 0 : i32
    %c0_i32_1 = arith.constant 0 : i32
    return %c0_i32, %c0_i32_0 : i32, i32
  }
  func.func @transform_3(%arg0: i32) -> (i32, i32) {
    %c0_i32 = arith.constant 0 : i32
    %c0_i32_0 = arith.constant 0 : i32
    %c0_i32_1 = arith.constant 0 : i32
    return %c0_i32, %c0_i32_0 : i32, i32
  }
  func.func @transform_4(%arg0: i32) -> (i32, i32) {
    %c0_i32 = arith.constant 0 : i32
    %c0_i32_0 = arith.constant 0 : i32
    %c0_i32_1 = arith.constant 0 : i32
    return %c0_i32, %c0_i32_0 : i32, i32
  }
  func.func @transform_5(%arg0: i32) -> (i32, i32) {
    %c0_i32 = arith.constant 0 : i32
    %c0_i32_0 = arith.constant 0 : i32
    %c0_i32_1 = arith.constant 0 : i32
    return %c0_i32, %c0_i32_0 : i32, i32
  }
  func.func @transform_6(%arg0: i32) -> (i32, i32) {
    %c0_i32 = arith.constant 0 : i32
    %c0_i32_0 = arith.constant 0 : i32
    %c0_i32_1 = arith.constant 0 : i32
    return %c0_i32, %c0_i32_0 : i32, i32
  }
  func.func @transform_7(%arg0: i32) -> (i32, i32) {
    %c0_i32 = arith.constant 0 : i32
    %c0_i32_0 = arith.constant 0 : i32
    %c0_i32_1 = arith.constant 0 : i32
    return %c0_i32, %c0_i32_0 : i32, i32
  }
  func.func @transform_8(%arg0: i32) -> (i32, i32) {
    %c0_i32 = arith.constant 0 : i32
    %c0_i32_0 = arith.constant 0 : i32
    %c0_i32_1 = arith.constant 0 : i32
    return %c0_i32, %c0_i32_0 : i32, i32
  }
  func.func @transform_9(%arg0: i32) -> (i32, i32) {
    %c0_i32 = arith.constant 0 : i32
    %c0_i32_0 = arith.constant 0 : i32
    %c0_i32_1 = arith.constant 0 : i32
    return %c0_i32, %c0_i32_0 : i32, i32
  }
  func.func @transform_10(%arg0: i32) -> (i32, i32) {
    %c0_i32 = arith.constant 0 : i32
    %c0_i32_0 = arith.constant 0 : i32
    return %arg0, %c0_i32 : i32, i32
  }
  func.func @transform_11(%arg0: i32) -> (i32, i32) {
    %c0_i32 = arith.constant 0 : i32
    %c0_i32_0 = arith.constant 0 : i32
    return %arg0, %c0_i32 : i32, i32
  }
}

</mosaic_0001>

<bundles_post_ra>
// kernel: tpu_custom_call.1
= control target key start
LH: loop header
LB: loop body
LE: loop exit
PB: predicated region body
PF: predicated region fallthrough
CT: control target
= control target key end

     0   :  { %17 = vsyncpa [#allocation3], 0  ;;  %s4969_s0 = inlined_call_operand.hbm [shape: f32[8,64], index: 0, kind: input, shape index: {}]   ;;  %s4970_s1 = inlined_call_operand.hbm [shape: f32[8,64], index: 1, kind: input, shape index: {}]   ;;  %s4971_s2 = inlined_call_operand.vmem [shape: f32[64,128], index: 2, kind: input, shape index: {}]   ;;  %s4972_s3 = inlined_call_operand.vmem [shape: f32[1,128], index: 3, kind: input, shape index: {}]   ;;  %s4973_s4 = inlined_call_operand.vmem [shape: f32[128,128], index: 4, kind: input, shape index: {}]   ;;  %s4974_s5 = inlined_call_operand.vmem [shape: f32[1,128], index: 5, kind: input, shape index: {}]   ;;  %s4975_s6 = inlined_call_operand.hbm [shape: f32[64,128], index: 6, kind: input, shape index: {}]   ;;  %s4976_s7 = inlined_call_operand.vmem [shape: f32[1,128], index: 7, kind: input, shape index: {}]   ;;  %s4977_s8 = inlined_call_operand.vmem [shape: f32[128,64], index: 8, kind: input, shape index: {}]   ;;  %s4978_s9 = inlined_call_operand.vmem [shape: f32[1,64], index: 9, kind: input, shape index: {}]   ;;  %s4979_s10 = inlined_call_operand.hbm [shape: f32[8,64], index: 10, kind: output, shape index: {0}]   ;;  %s4980_s11 = inlined_call_operand.hbm [shape: f32[8,128], index: 11, kind: output, shape index: {1}]  }
   0x1   :  { %18 = vsyncpa [#allocation6], 0 }
   0x2   :  { %19 = vsyncpa [#allocation4], 0 }
   0x3   :  { %20 = vsyncpa [#allocation10], 0  ;;  %s3650_s17 = smov [#allocation5]   ;;  %s3651_s19 = smov [#allocation2]  }
   0x4   :  { %s37_s18 = sshll.u32 %s3650_s17, 4  ;;  %s27_s20 = sshll.u32 %s3651_s19, 4  ;;  %s38_s18 = int_to_ptr.vmem [resolvable:$true] %s37_s18  ;;  %s28_s20 = int_to_ptr.vmem [resolvable:$true] %s27_s20 }
   0x5   :  { %s3550_s21 = scalar_lea.vmem %s38_s18, 128  ;;  %p3555_p1 = scmp.lt.s32.totalorder %s38_s18, %s38_s18 }
   0x6   :  { %p3551_p0 = scmp.ne.s32.totalorder %s38_s18, %s3550_s21  ;;  %p3556_p2 = scmp.lt.s32.totalorder %s3550_s21, %s3550_s21 }
   0x8   :  { %p3557_p3 = por %p3556_p2, %p3555_p1 }
   0xa   :  { %p3558_p4 = pnand %p3557_p3, %p3551_p0 }
   0xc   :  { %3561 = shalt.err (!%p3558_p4)
}
   0xd   :  { %40 = dma.hbm_to_vmem [thread:$0]  %s4970_s1, 128, %s38_s18, [#allocation6]  }
   0xe   :  { %s3570_s24 = scalar_lea.vmem %s28_s20, 128  ;;  %p3575_p6 = scmp.lt.s32.totalorder %s28_s20, %s28_s20 }
   0xf   :  { %p3571_p5 = scmp.ne.s32.totalorder %s28_s20, %s3570_s24  ;;  %p3576_p7 = scmp.lt.s32.totalorder %s3570_s24, %s3570_s24 }
  0x11   :  { %p3577_p8 = por %p3576_p7, %p3575_p6 }
  0x13   :  { %p3578_p9 = pnand %p3577_p8, %p3571_p5 }
  0x15   :  { %3581 = shalt.err (!%p3578_p9)
}
  0x16   :  { %30 = dma.hbm_to_vmem [thread:$0]  %s4969_s0, 128, %s28_s20, [#allocation3]  }
  0x17   :  { %s3652_s27 = smov [#allocation7]  }
  0x18   :  { %s54_s28 = sshll.u32 %s3652_s27, 4  ;;  %s55_s28 = int_to_ptr.vmem [resolvable:$true] %s54_s28 }
  0x19   :  { %s3590_s29 = scalar_lea.vmem %s55_s28, 1024  ;;  %p3595_p11 = scmp.lt.s32.totalorder %s55_s28, %s55_s28 }
  0x1a   :  { %p3591_p10 = scmp.ne.s32.totalorder %s55_s28, %s3590_s29  ;;  %p3596_p12 = scmp.lt.s32.totalorder %s3590_s29, %s3590_s29 }
  0x1c   :  { %p3597_p13 = por %p3596_p12, %p3595_p11 }
  0x1e   :  { %p3598_p0 = pnand %p3597_p13, %p3591_p10 }
  0x20   :  { %3601 = shalt.err (!%p3598_p0)
}
  0x21   :  { %s3653_s1 = smov 128   ;;  %s3654_s30 = smov 8  }
  0x22   :  { %60 = dma.hbm_to_vmem [thread:$0]  %s4975_s6, 1024, %s55_s28, [#allocation6], %s3653_s1, %s3653_s1, %s3654_s30  }
  0x23   :  { %3642 = dma.done.wait [#allocation3], 128  }
  0x24   :  { %3643 = vsyncadd [#allocation3], 4294967168 }
  0x25   :  { %3644 = dma.done.wait [#allocation6], 1152  }
  0x26   :  { %3645 = vsyncadd [#allocation6], 4294966144  ;;  %v3655_v0 = vmov 0.0   ;;  %vm3656_vm0 = vmmov 0   ;;  %v84_v1 = vld [vmem:[%s4971_s2 + $0x38] sm:$0xff]  ;;  %v83_v2 = vld [vmem:[%s4971_s2 + $0x30] sm:$0xff] }
  0x27   :  { %2880 = vmatprep.subr.mxu0 %v3655_v0  ;;  %2899 = vmatprep.subr.mxu1 %v3655_v0  ;;  %v82_v3 = vld [vmem:[%s4971_s2 + $0x28] sm:$0xff]  ;;  %vm92_vm1 = vcmask 523264   ;;  %v3744_v4 = vand.u32 4294901760, %v84_v1  ;;  %v3746_v5 = vand.u32 4294901760, %v83_v2  ;;  %v81_v7 = vld [vmem:[%s4971_s2 + $0x20] sm:$0xff]  ;;  %v80_v8 = vld [vmem:[%s4971_s2 + $0x18] sm:$0xff] }
  0x28   :  { %2896 = vmatprep.mubr.msk.f32.mxu0 %vm3656_vm0, %v3655_v0  ;;  %2915 = vmatprep.mubr.msk.f32.mxu1 %vm3656_vm0, %v3655_v0  ;;  %v3748_v6 = vand.u32 4294901760, %v82_v3  ;;  %v79_v9 = vld [vmem:[%s4971_s2 + $0x10] sm:$0xff]  ;;  %v3759_v10 = vand.u32 4294901760, %v81_v7  ;;  %v3761_v11 = vand.u32 4294901760, %v80_v8  ;;  %v78_v13 = vld [vmem:[%s4971_s2 + $0x8] sm:$0xff]  ;;  %v77_v14 = vld [vmem:[%s4971_s2] sm:$0xff] }
  0x29   :  { %v3763_v12 = vand.u32 4294901760, %v79_v9  ;;  %v76_v15 = vld [vmem:[#allocation2] sm:$0xff]  ;;  %2881 = vmatpush3.msra.mxu0 %v3744_v4  ;;  %v3773_v16 = vsub.f32 %v84_v1, %v3744_v4  ;;  %v3776_v17 = vsub.f32 %v83_v2, %v3746_v5  ;;  %v3778_v18 = vand.u32 4294901760, %v78_v13  ;;  %v649_v56 = vld [vmem:[%s4973_s4 + $0x78] sm:$0xff]  ;;  %v648_v58 = vld [vmem:[%s4973_s4 + $0x70] sm:$0xff] }
  0x2a   :  { %v3781_v19 = vsub.f32 %v82_v3, %v3748_v6  ;;  %2882 = vmatprep.subr.mxu0 %v3655_v0  ;;  %v3784_v20 = vand.u32 4294901760, %v77_v14  ;;  %v3787_v21 = vsub.f32 %v81_v7, %v3759_v10  ;;  %v94_v22 = vsel %vm92_vm1, %v76_v15, 0  ;;  %v647_v61 = vld [vmem:[%s4973_s4 + $0x68] sm:$0xff]  ;;  %v646_v2 = vld [vmem:[%s4973_s4 + $0x60] sm:$0xff]  ;;  %v645_v7 = vld [vmem:[%s4973_s4 + $0x58] sm:$0xff] }
  0x2b   :  { %v3791_v23 = vsub.f32 %v80_v8, %v3761_v11  ;;  %2883 = vmatpush3.msra.mxu0 %v3746_v5  ;;  %v198_v24 = vand.u32 4294901760, %v3773_v16  ;;  %v205_v25 = vand.u32 4294901760, %v3776_v17  ;;  %v3797_v27 = vand.u32 4294901760, %v94_v22 }
  0x2c   :  { %v212_v26 = vand.u32 4294901760, %v3781_v19  ;;  %2884 = vmatprep.subr.mxu0 %v3655_v0  ;;  %v219_v28 = vand.u32 4294901760, %v3787_v21  ;;  %v3803_v30 = vsub.f32 %v79_v9, %v3763_v12  ;;  %v3806_v31 = vsub.f32 %v78_v13, %v3778_v18  ;;  %v644_v13 = vld [vmem:[%s4973_s4 + $0x50] sm:$0xff] }
  0x2d   :  { %v226_v29 = vand.u32 4294901760, %v3791_v23  ;;  %2885 = vmatpush3.msra.mxu0 %v3748_v6  ;;  %v199_v32 = vsub.f32 %v3773_v16, %v198_v24  ;;  %v206_v33 = vsub.f32 %v3776_v17, %v205_v25  ;;  %v3819_v35 = vsub.f32 %v94_v22, %v3797_v27 }
  0x2e   :  { %v213_v34 = vsub.f32 %v3781_v19, %v212_v26  ;;  %2886 = vmatprep.subr.mxu0 %v3655_v0  ;;  %v220_v36 = vsub.f32 %v3787_v21, %v219_v28  ;;  %v233_v40 = vand.u32 4294901760, %v3803_v30  ;;  %v240_v44 = vand.u32 4294901760, %v3806_v31 }
  0x2f   :  { %2887 = vmatpush3.msra.mxu0 %v3759_v10  ;;  %v200_v37 = vand.u32 4294901760, %v199_v32  ;;  %v207_v38 = vand.u32 4294901760, %v206_v33  ;;  %v171_v39 = vand.u32 4294901760, %v3819_v35  ;;  %v227_v41 = vsub.f32 %v3791_v23, %v226_v29 }
  0x30   :  { %2888 = vmatprep.subr.mxu0 %v3655_v0  ;;  %v214_v42 = vand.u32 4294901760, %v213_v34  ;;  %v3838_v45 = vsub.f32 %v77_v14, %v3784_v20  ;;  %v221_v46 = vand.u32 4294901760, %v220_v36  ;;  %v234_v47 = vsub.f32 %v3803_v30, %v233_v40 }
  0x31   :  { %2889 = vmatpush3.msra.mxu0 %v3761_v11  ;;  %2900 = vmatpush3.msra.mxu1 %v200_v37  ;;  %v172_v43 = vsub.f32 %v3819_v35, %v171_v39  ;;  %v228_v50 = vand.u32 4294901760, %v227_v41  ;;  %v241_v51 = vsub.f32 %v3806_v31, %v240_v44  ;;  %v3958_v57 = vand.u32 4294901760, %v649_v56  ;;  %v640_v37 = vld [vmem:[%s4973_s4 + $0x30] sm:$0xff] }
  0x32   :  { %2890 = vmatprep.subr.mxu0 %v3655_v0  ;;  %2901 = vmatprep.subr.mxu1 %v3655_v0  ;;  %v247_v48 = vand.u32 4294901760, %v3838_v45  ;;  %v235_v52 = vand.u32 4294901760, %v234_v47  ;;  %v3966_v60 = vand.u32 4294901760, %v648_v58  ;;  %v3977_v1 = vand.u32 4294901760, %v647_v61 }
  0x33   :  { %2891 = vmatpush3.msra.mxu0 %v3763_v12  ;;  %2902 = vmatpush3.msra.mxu1 %v207_v38  ;;  %v173_v49 = vand.u32 4294901760, %v172_v43  ;;  %v242_v54 = vand.u32 4294901760, %v241_v51  ;;  %v3964_v59 = vsub.f32 %v649_v56, %v3958_v57  ;;  %v639_v43 = vld [vmem:[%s4973_s4 + $0x28] sm:$0xff] }
  0x34   :  { %2892 = vmatprep.subr.mxu0 %v3655_v0  ;;  %2903 = vmatprep.subr.mxu1 %v3655_v0  ;;  %v248_v53 = vsub.f32 %v3838_v45, %v247_v48  ;;  %v3975_v63 = vsub.f32 %v648_v58, %v3966_v60  ;;  %v4090_v47 = vand.u32 4294901760, %v639_v43 }
  0x35   :  { %2893 = vmatpush3.msra.mxu0 %v3778_v18  ;;  %2904 = vmatpush3.msra.mxu1 %v214_v42  ;;  %v751_v62 = vand.u32 4294901760, %v3964_v59  ;;  %v4079_v42 = vand.u32 4294901760, %v640_v37 }
  0x36   :  { %2894 = vmatprep.subr.mxu0 %v3655_v0  ;;  %2905 = vmatprep.subr.mxu1 %v3655_v0  ;;  %v249_v55 = vand.u32 4294901760, %v248_v53 }
  0x37   :  { %2895 = vmatpush3.msra.mxu0 %v3784_v20  ;;  %2906 = vmatpush3.msra.mxu1 %v221_v46  ;;  %v752_v3 = vsub.f32 %v3964_v59, %v751_v62 }
  0x38   :  { %2907 = vmatprep.subr.mxu1 %v3655_v0  ;;  %2918 = vmatprep.subr.mxu0 %v3655_v0 }
  0x39   :  { %2897 = vmatmul.mubr.f32.vlgmr.msra.gmra.mxu0 %v173_v49  ;;  %2908 = vmatpush3.msra.mxu1 %v228_v50  ;;  %v753_v8 = vand.u32 4294901760, %v752_v3  ;;  %v638_v49 = vld [vmem:[%s4973_s4 + $0x20] sm:$0xff] }
  0x3a   :  { %2919 = vmatpush3.msra.mxu0 %v3773_v16  ;;  %2909 = vmatprep.subr.mxu1 %v3655_v0  ;;  %v4107_v53 = vand.u32 4294901760, %v638_v49 }
  0x3b   :  { %2920 = vmatprep.subr.mxu0 %v3655_v0  ;;  %2910 = vmatpush3.msra.mxu1 %v235_v52  ;;  %v4105_v52 = vsub.f32 %v639_v43, %v4090_v47 }
  0x3c   :  { %2921 = vmatpush3.msra.mxu0 %v3776_v17  ;;  %2911 = vmatprep.subr.mxu1 %v3655_v0  ;;  %v4016_v17 = vand.u32 4294901760, %v644_v13 }
  0x3d   :  { %2922 = vmatprep.subr.mxu0 %v3655_v0  ;;  %2912 = vmatpush3.msra.mxu1 %v242_v54  ;;  %v821_v58 = vand.u32 4294901760, %v4105_v52 }
  0x3e   :  { %2923 = vmatpush3.msra.mxu0 %v3781_v19  ;;  %2913 = vmatprep.subr.mxu1 %v3655_v0  ;;  %v643_v19 = vld [vmem:[%s4973_s4 + $0x48] sm:$0xff]  ;;  %v4030_v22 = vsub.f32 %v644_v13, %v4016_v17 }
  0x3f   :  { %2924 = vmatprep.subr.mxu0 %v3655_v0  ;;  %2914 = vmatpush3.msra.mxu1 %v249_v55  ;;  %v637_v55 = vld [vmem:[%s4973_s4 + $0x18] sm:$0xff] }
  0x40   :  { %2925 = vmatpush3.msra.mxu0 %v3787_v21  ;;  %2916 = vmatmul.mubr.f32.vlgmr.msra.gmra.mxu1 %v3797_v27 }
  0x41   :  { %2926 = vmatprep.subr.mxu0 %v3655_v0  ;;  %2937 = vmatprep.subr.mxu1 %v3655_v0 }
  0x42   :  { %2927 = vmatpush3.msra.mxu0 %v3791_v23  ;;  %2938 = vmatpush3.msra.mxu1 %v3744_v4  ;;  %v4032_v23 = vand.u32 4294901760, %v643_v19 }
  0x43   :  { %2928 = vmatprep.subr.mxu0 %v3655_v0  ;;  %2939 = vmatprep.subr.mxu1 %v3655_v0 }
  0x44   :  { %2929 = vmatpush3.msra.mxu0 %v3803_v30  ;;  %2940 = vmatpush3.msra.mxu1 %v3746_v5 }
  0x45   :  { %2930 = vmatprep.subr.mxu0 %v3655_v0  ;;  %2941 = vmatprep.subr.mxu1 %v3655_v0 }
  0x46   :  { %2931 = vmatpush3.msra.mxu0 %v3806_v31  ;;  %2942 = vmatpush3.msra.mxu1 %v3748_v6  ;;  %v641_v31 = vld [vmem:[%s4973_s4 + $0x38] sm:$0xff] }
  0x47   :  { %2932 = vmatprep.subr.mxu0 %v3655_v0  ;;  %2943 = vmatprep.subr.mxu1 %v3655_v0 }
  0x48   :  { %2933 = vmatpush3.msra.mxu0 %v3838_v45  ;;  %2934 = vmatprep.mubr.msk.f32.mxu0 %vm3656_vm0, %v3655_v0 }
  0x49   :  { %2944 = vmatpush3.msra.mxu1 %v3759_v10  ;;  %2935 = vmatmul.mubr.f32.vlgmr.msra.gmra.mxu0 %v3819_v35  ;;  %v4063_v35 = vand.u32 4294901760, %v641_v31 }
  0x4a   :  { %2945 = vmatprep.subr.mxu1 %v3655_v0  ;;  %2956 = vmatprep.subr.mxu0 %v3655_v0 }
  0x4b   :  { %2946 = vmatpush3.msra.mxu1 %v3761_v11  ;;  %2957 = vmatpush3.msra.mxu0 %v198_v24  ;;  %v4076_v41 = vsub.f32 %v641_v31, %v4063_v35  ;;  %v634_v31 = vld [vmem:[%s4973_s4] sm:$0xff] }
  0x4c   :  { %2947 = vmatprep.subr.mxu1 %v3655_v0  ;;  %2958 = vmatprep.subr.mxu0 %v3655_v0 }
  0x4d   :  { %2948 = vmatpush3.msra.mxu1 %v3763_v12  ;;  %2959 = vmatpush3.msra.mxu0 %v205_v25  ;;  %v642_v25 = vld [vmem:[%s4973_s4 + $0x40] sm:$0xff]  ;;  %v807_v46 = vand.u32 4294901760, %v4076_v41 }
  0x4e   :  { %2949 = vmatprep.subr.mxu1 %v3655_v0  ;;  %2960 = vmatprep.subr.mxu0 %v3655_v0 }
  0x4f   :  { %2950 = vmatpush3.msra.mxu1 %v3778_v18  ;;  %2961 = vmatpush3.msra.mxu0 %v212_v26  ;;  %v808_v51 = vsub.f32 %v4076_v41, %v807_v46 }
  0x50   :  { %2951 = vmatprep.subr.mxu1 %v3655_v0  ;;  %2962 = vmatprep.subr.mxu0 %v3655_v0 }
  0x51   :  { %2952 = vmatpush3.msra.mxu1 %v3784_v20  ;;  %2953 = vmatprep.mubr.msk.f32.mxu1 %vm3656_vm0, %v3655_v0  ;;  %v809_v56 = vand.u32 4294901760, %v808_v51 }
  0x52   :  { %2963 = vmatpush3.msra.mxu0 %v219_v28  ;;  %2954 = vmatmul.mubr.f32.vlgmr.msra.gmra.mxu1 %v171_v39  ;;  %v4043_v28 = vsub.f32 %v643_v19, %v4032_v23  ;;  %v635_v19 = vld [vmem:[%s4973_s4 + $0x8] sm:$0xff] }
  0x53   :  { %2964 = vmatprep.subr.mxu0 %v3655_v0  ;;  %2975 = vmatprep.subr.mxu1 %v3655_v0 }
  0x54   :  { %2965 = vmatpush3.msra.mxu0 %v226_v29  ;;  %2976 = vmatpush3.msra.mxu1 %v3744_v4  ;;  %v758_v4 = vand.u32 4294901760, %v3975_v63  ;;  %v4045_v29 = vand.u32 4294901760, %v642_v25  ;;  %v793_v33 = vand.u32 4294901760, %v4043_v28 }
  0x55   :  { %2966 = vmatprep.subr.mxu0 %v3655_v0  ;;  %2977 = vmatprep.subr.mxu1 %v3655_v0 }
  0x56   :  { %2967 = vmatpush3.msra.mxu0 %v233_v40  ;;  %2978 = vmatpush3.msra.mxu1 %v3746_v5  ;;  %v3989_v5 = vsub.f32 %v647_v61, %v3977_v1  ;;  %v759_v9 = vsub.f32 %v3975_v63, %v758_v4  ;;  %v4061_v34 = vsub.f32 %v642_v25, %v4045_v29 }
  0x57   :  { %2968 = vmatprep.subr.mxu0 %v3655_v0  ;;  %2979 = vmatprep.subr.mxu1 %v3655_v0  ;;  %v794_v39 = vsub.f32 %v4043_v28, %v793_v33  ;;  %v4118_v61 = vsub.f32 %v638_v49, %v4107_v53 }
  0x58   :  { %2969 = vmatpush3.msra.mxu0 %v240_v44  ;;  %2980 = vmatpush3.msra.mxu1 %v3748_v6  ;;  %v3991_v6 = vand.u32 4294901760, %v646_v2  ;;  %v760_v14 = vand.u32 4294901760, %v759_v9  ;;  %v800_v40 = vand.u32 4294901760, %v4061_v34 }
  0x59   :  { %2970 = vmatprep.subr.mxu0 %v3655_v0  ;;  %2981 = vmatprep.subr.mxu1 %v3655_v0  ;;  %v795_v44 = vand.u32 4294901760, %v794_v39  ;;  %v828_v9 = vand.u32 4294901760, %v4118_v61 }
  0x5a   :  { %2971 = vmatpush3.msra.mxu0 %v247_v48  ;;  %2972 = vmatprep.mubr.msk.f32.mxu0 %vm3656_vm0, %v3655_v0  ;;  %v801_v45 = vsub.f32 %v4061_v34, %v800_v40  ;;  %v4094_v48 = vsub.f32 %v640_v37, %v4079_v42 }
  0x5b   :  { %2982 = vmatpush3.msra.mxu1 %v3759_v10  ;;  %2973 = vmatmul.mubr.f32.vlgmr.msra.gmra.mxu0 %v3797_v27  ;;  %v765_v10 = vand.u32 4294901760, %v3989_v5 }
  0x5c   :  { %2983 = vmatprep.subr.mxu1 %v3655_v0  ;;  %2991 = vmatprep.mubr.msk.f32.mxu1 %vm3656_vm0, %v3655_v0  ;;  %v802_v50 = vand.u32 4294901760, %v801_v45  ;;  %v814_v54 = vand.u32 4294901760, %v4094_v48 }
  0x5d   :  { %2984 = vmatpush3.msra.mxu1 %v3761_v11  ;;  %2994 = vmatprep.subr.mxu0 %v3655_v0  ;;  %v4003_v11 = vsub.f32 %v646_v2, %v3991_v6  ;;  %v766_v15 = vsub.f32 %v3989_v5, %v765_v10  ;;  %v4120_v2 = vand.u32 4294901760, %v637_v55 }
  0x5e   :  { %2985 = vmatprep.subr.mxu1 %v3655_v0  ;;  %3026 = vmatprep.mubr.msk.f32.mxu0 %vm3656_vm0, %v3655_v0  ;;  %v815_v3 = vsub.f32 %v4094_v48, %v814_v54 }
  0x5f   :  { %2986 = vmatpush3.msra.mxu1 %v3763_v12  ;;  %2995 = vmatpush3.msra.mxu0 %v3958_v57  ;;  %v4006_v12 = vand.u32 4294901760, %v645_v7  ;;  %v772_v16 = vand.u32 4294901760, %v4003_v11  ;;  %v4136_v13 = vsub.f32 %v637_v55, %v4120_v2 }
  0x60   :  { %2987 = vmatprep.subr.mxu1 %v3655_v0  ;;  %2996 = vmatprep.subr.mxu0 %v3655_v0 }
  0x61   :  { %2988 = vmatpush3.msra.mxu1 %v3778_v18  ;;  %2997 = vmatpush3.msra.mxu0 %v3966_v60  ;;  %v4020_v18 = vsub.f32 %v645_v7, %v4006_v12  ;;  %v773_v21 = vsub.f32 %v4003_v11, %v772_v16  ;;  %v636_v7 = vld [vmem:[%s4973_s4 + $0x10] sm:$0xff]  ;;  %v4984_v25 = vand.u32 4294901760, %v4136_v13 }
  0x62   :  { %2989 = vmatprep.subr.mxu1 %v3655_v0  ;;  %2998 = vmatprep.subr.mxu0 %v3655_v0 }
  0x63   :  { %2990 = vmatpush3.msra.mxu1 %v3784_v20  ;;  %2999 = vmatpush3.msra.mxu0 %v3977_v1  ;;  %v767_v20 = vand.u32 4294901760, %v766_v15  ;;  %v779_v24 = vand.u32 4294901760, %v4020_v18  ;;  %v774_v26 = vand.u32 4294901760, %v773_v21  ;;  %v816_v15 = vand.u32 4294901760, %v815_v3 }
  0x64   :  { %2992 = vmatmul.mubr.f32.vlgmr.msra.gmra.mxu1 %v3797_v27  ;;  %3029 = vmatprep.subr.mxu1 %v3655_v0  ;;  %v786_v27 = vand.u32 4294901760, %v4030_v22  ;;  %v829_v21 = vsub.f32 %v4118_v61, %v828_v9 }
  0x65   :  { %3061 = vmatprep.mubr.msk.f32.mxu1 %vm3656_vm0, %v3655_v0  ;;  %3000 = vmatprep.subr.mxu0 %v3655_v0  ;;  %v780_v30 = vsub.f32 %v4020_v18, %v779_v24 }
  0x66   :  { %3001 = vmatpush3.msra.mxu0 %v3991_v6  ;;  %3030 = vmatpush3.msra.mxu1 %v753_v8  ;;  %v787_v32 = vsub.f32 %v4030_v22, %v786_v27  ;;  %v822_v8 = vsub.f32 %v4105_v52, %v821_v58 }
  0x67   :  { %3002 = vmatprep.subr.mxu0 %v3655_v0  ;;  %3031 = vmatprep.subr.mxu1 %v3655_v0  ;;  %v781_v36 = vand.u32 4294901760, %v780_v30  ;;  %v4154_v30 = vand.u32 4294901760, %v635_v19 }
  0x68   :  { %3003 = vmatpush3.msra.mxu0 %v4006_v12  ;;  %3032 = vmatpush3.msra.mxu1 %v760_v14  ;;  %v788_v38 = vand.u32 4294901760, %v787_v32  ;;  %v4138_v14 = vand.u32 4294901760, %v636_v7  ;;  %v830_v32 = vand.u32 4294901760, %v829_v21 }
  0x69   :  { %3004 = vmatprep.subr.mxu0 %v3655_v0  ;;  %3033 = vmatprep.subr.mxu1 %v3655_v0  ;;  %v4169_v39 = vsub.f32 %v635_v19, %v4154_v30 }
  0x6a   :  { %3005 = vmatpush3.msra.mxu0 %v4016_v17  ;;  %3034 = vmatpush3.msra.mxu1 %v767_v20  ;;  %v823_v20 = vand.u32 4294901760, %v822_v8 }
  0x6b   :  { %3006 = vmatprep.subr.mxu0 %v3655_v0  ;;  %3035 = vmatprep.subr.mxu1 %v3655_v0  ;;  %v4982_v49 = vand.u32 4294901760, %v4169_v39 }
  0x6c   :  { %3007 = vmatpush3.msra.mxu0 %v4032_v23  ;;  %3036 = vmatpush3.msra.mxu1 %v774_v26  ;;  %v4151_v26 = vsub.f32 %v636_v7, %v4138_v14 }
  0x6d   :  { %3008 = vmatprep.subr.mxu0 %v3655_v0  ;;  %3037 = vmatprep.subr.mxu1 %v3655_v0  ;;  %v850_v55 = vsub.f32 %v4169_v39, %v4982_v49 }
  0x6e   :  { %3009 = vmatpush3.msra.mxu0 %v4045_v29  ;;  %3038 = vmatpush3.msra.mxu1 %v781_v36  ;;  %v836_v36 = vsub.f32 %v4136_v13, %v4984_v25  ;;  %v4983_v37 = vand.u32 4294901760, %v4151_v26 }
  0x6f   :  { %3010 = vmatprep.subr.mxu0 %v3655_v0  ;;  %3039 = vmatprep.subr.mxu1 %v3655_v0  ;;  %v851_v3 = vand.u32 4294901760, %v850_v55 }
  0x70   :  { %3011 = vmatpush3.msra.mxu0 %v4063_v35  ;;  %3040 = vmatpush3.msra.mxu1 %v788_v38  ;;  %v4165_v38 = vand.u32 4294901760, %v634_v31  ;;  %v837_v43 = vand.u32 4294901760, %v836_v36 }
  0x71   :  { %3012 = vmatprep.subr.mxu0 %v3655_v0  ;;  %3041 = vmatprep.subr.mxu1 %v3655_v0 }
  0x72   :  { %3013 = vmatpush3.msra.mxu0 %v4079_v42  ;;  %3042 = vmatpush3.msra.mxu1 %v795_v44  ;;  %v843_v44 = vsub.f32 %v4151_v26, %v4983_v37  ;;  %v4177_v45 = vsub.f32 %v634_v31, %v4165_v38 }
  0x73   :  { %3014 = vmatprep.subr.mxu0 %v3655_v0  ;;  %3043 = vmatprep.subr.mxu1 %v3655_v0 }
  0x74   :  { %3015 = vmatpush3.msra.mxu0 %v4090_v47  ;;  %3044 = vmatpush3.msra.mxu1 %v802_v50  ;;  %v844_v50 = vand.u32 4294901760, %v843_v44  ;;  %v4981_v51 = vand.u32 4294901760, %v4177_v45 }
  0x75   :  { %3016 = vmatprep.subr.mxu0 %v3655_v0  ;;  %3045 = vmatprep.subr.mxu1 %v3655_v0 }
  0x76   :  { %3017 = vmatpush3.msra.mxu0 %v4107_v53  ;;  %3046 = vmatpush3.msra.mxu1 %v809_v56  ;;  %v857_v56 = vsub.f32 %v4177_v45, %v4981_v51 }
  0x77   :  { %3018 = vmatprep.subr.mxu0 %v3655_v0  ;;  %3047 = vmatprep.subr.mxu1 %v3655_v0 }
  0x78   :  { %3019 = vmatpush3.msra.mxu0 %v4120_v2  ;;  %3048 = vmatpush3.msra.mxu1 %v816_v15  ;;  %v858_v7 = vand.u32 4294901760, %v857_v56 }
  0x79   :  { %3020 = vmatprep.subr.mxu0 %v3655_v0  ;;  %3049 = vmatprep.subr.mxu1 %v3655_v0 }
  0x7a   :  { %3021 = vmatpush3.msra.mxu0 %v4138_v14  ;;  %3050 = vmatpush3.msra.mxu1 %v823_v20 }
  0x7b   :  { %3022 = vmatprep.subr.mxu0 %v3655_v0  ;;  %3051 = vmatprep.subr.mxu1 %v3655_v0 }
  0x7c   :  { %3023 = vmatpush3.msra.mxu0 %v4154_v30  ;;  %3052 = vmatpush3.msra.mxu1 %v830_v32 }
  0x7d   :  { %3024 = vmatprep.subr.mxu0 %v3655_v0  ;;  %3053 = vmatprep.subr.mxu1 %v3655_v0 }
  0x7e   :  { %3025 = vmatpush3.msra.mxu0 %v4165_v38  ;;  %3054 = vmatpush3.msra.mxu1 %v837_v43  ;;  %v2564_v43 = vld [vmem:[%s4972_s3] ss:$0 sm:$0xff] }
  0x7f   :  { %3064 = vmatprep.subr.mxu0 %v3655_v0  ;;  %3055 = vmatprep.subr.mxu1 %v3655_v0 }
  0x80   :  { %3056 = vmatpush3.msra.mxu1 %v844_v50 }
  0x81   :  { %3057 = vmatprep.subr.mxu1 %v3655_v0 }
  0x82   :  { %3058 = vmatpush3.msra.mxu1 %v851_v3 }
  0x83   :  { %3059 = vmatprep.subr.mxu1 %v3655_v0 }
  0x84   :  { %3060 = vmatpush3.msra.mxu1 %v858_v7 }
  0x85   :  { %3099 = vmatprep.subr.mxu1 %v3655_v0 }
  0xf9   :  { %v175_v8 = vpop.f32.mrf.mxu0 }
  0xfa   :  { %v176_v44 = vadd.f32 %v2564_v43, %v175_v8 }
  0xfb   :  { %v2898_v15 = vpop.f32.mrf.mxu0 }
 0x100   :  { %v286_v19 = vpop.f32.mrf.mxu1 }
 0x101   :  { %v287_v55 = vadd.f32 %v286_v19, %v176_v44  ;;  %v1311_v19 = vld [vmem:[#allocation7 + $0x10] sm:$0xff]  ;;  %v1310_v44 = vld [vmem:[#allocation7 + $0x8] sm:$0xff] }
 0x102   :  { %v2917_v20 = vpop.f32.mrf.mxu1 }
 0x109   :  { %v374_v21 = vpop.f32.mrf.mxu0 }
 0x10a   :  { %v375_v3 = vadd.f32 %v374_v21, %v287_v55 }
 0x10b   :  { %v2936_v31 = vpop.f32.mrf.mxu0 }
 0x112   :  { %v455_v32 = vpop.f32.mrf.mxu1 }
 0x113   :  { %v456_v7 = vadd.f32 %v455_v32, %v375_v3  ;;  %v4429_v3 = vand.u32 4294901760, %v1310_v44 }
 0x114   :  { %v2955_v36 = vpop.f32.mrf.mxu1 }
 0x115   :  { %v4421_v36 = vand.u32 4294901760, %v1311_v19 }
 0x11b   :  { %v550_v50 = vpop.f32.mrf.mxu0 }
 0x11c   :  { %v551_v51 = vadd.f32 %v550_v50, %v456_v7  ;;  %v1309_v7 = vld [vmem:[#allocation7] sm:$0xff] }
 0x11d   :  { %v2974_v56 = vpop.f32.mrf.mxu0 }
 0x11e   :  { %v4427_v56 = vsub.f32 %v1311_v19, %v4421_v36 }
 0x124   :  { %v629_v49 = vpop.f32.mrf.mxu1 }
 0x125   :  { %v630_v37 = vadd.f32 %v629_v49, %v551_v51 }
 0x126   :  { %v2993_v15 = vpop.f32.mrf.mxu1 }
 0x127   :  { %v633_v25 = vmax.f32 %v630_v37, 0.0 }
 0x129   :  { %v4198_v20 = vand.u32 4294901760, %v633_v25 }
 0x12b   :  { %v4201_v31 = vsub.f32 %v633_v25, %v4198_v20  ;;  %3062 = vmatmul.mubr.f32.vlgmr.msra.gmra.mxu1 %v4198_v20 }
 0x12c   :  { %3100 = vmatpush3.msra.mxu1 %v3958_v57  ;;  %3131 = vmatprep.mubr.msk.f32.mxu1 %vm3656_vm0, %v3655_v0 }
 0x12d   :  { %v740_v8 = vand.u32 4294901760, %v4201_v31  ;;  %3101 = vmatprep.subr.mxu1 %v3655_v0 }
 0x12e   :  { %3102 = vmatpush3.msra.mxu1 %v3966_v60 }
 0x12f   :  { %v741_v37 = vsub.f32 %v4201_v31, %v740_v8  ;;  %3103 = vmatprep.subr.mxu1 %v3655_v0 }
 0x130   :  { %3104 = vmatpush3.msra.mxu1 %v3977_v1 }
 0x131   :  { %3105 = vmatprep.subr.mxu1 %v3655_v0  ;;  %v742_v25 = vand.u32 4294901760, %v741_v37  ;;  %v4441_v37 = vand.u32 4294901760, %v1309_v7 }
 0x132   :  { %3106 = vmatpush3.msra.mxu1 %v3991_v6 }
 0x133   :  { %3107 = vmatprep.subr.mxu1 %v3655_v0  ;;  %3027 = vmatmul.mubr.f32.vlgmr.msra.gmra.mxu0 %v742_v25 }
 0x134   :  { %3065 = vmatpush3.msra.mxu0 %v3964_v59  ;;  %3108 = vmatpush3.msra.mxu1 %v4006_v12  ;;  %v4990_v59 = vand.u32 4294901760, %v4151_v26 }
 0x135   :  { %3066 = vmatprep.subr.mxu0 %v3655_v0  ;;  %3109 = vmatprep.subr.mxu1 %v3655_v0 }
 0x136   :  { %3067 = vmatpush3.msra.mxu0 %v3975_v63  ;;  %3110 = vmatpush3.msra.mxu1 %v4016_v17  ;;  %v1316_v63 = vld [vmem:[#allocation7 + $0x38] sm:$0xff] }
 0x137   :  { %3068 = vmatprep.subr.mxu0 %v3655_v0  ;;  %3111 = vmatprep.subr.mxu1 %v3655_v0 }
 0x138   :  { %3069 = vmatpush3.msra.mxu0 %v3989_v5  ;;  %3112 = vmatpush3.msra.mxu1 %v4032_v23  ;;  %v4365_v5 = vand.u32 4294901760, %v1316_v63 }
 0x139   :  { %3070 = vmatprep.subr.mxu0 %v3655_v0  ;;  %3113 = vmatprep.subr.mxu1 %v3655_v0 }
 0x13a   :  { %3071 = vmatpush3.msra.mxu0 %v4003_v11  ;;  %3114 = vmatpush3.msra.mxu1 %v4045_v29  ;;  %v1313_v11 = vld [vmem:[#allocation7 + $0x20] sm:$0xff] }
 0x13b   :  { %3072 = vmatprep.subr.mxu0 %v3655_v0  ;;  %3115 = vmatprep.subr.mxu1 %v3655_v0 }
 0x13c   :  { %3073 = vmatpush3.msra.mxu0 %v4020_v18  ;;  %3116 = vmatpush3.msra.mxu1 %v4063_v35 }
 0x13d   :  { %3074 = vmatprep.subr.mxu0 %v3655_v0  ;;  %3117 = vmatprep.subr.mxu1 %v3655_v0 }
 0x13e   :  { %3075 = vmatpush3.msra.mxu0 %v4030_v22  ;;  %3118 = vmatpush3.msra.mxu1 %v4079_v42 }
 0x13f   :  { %3076 = vmatprep.subr.mxu0 %v3655_v0  ;;  %3119 = vmatprep.subr.mxu1 %v3655_v0 }
 0x140   :  { %3077 = vmatpush3.msra.mxu0 %v4043_v28  ;;  %3120 = vmatpush3.msra.mxu1 %v4090_v47 }
 0x141   :  { %3078 = vmatprep.subr.mxu0 %v3655_v0  ;;  %3121 = vmatprep.subr.mxu1 %v3655_v0 }
 0x142   :  { %3079 = vmatpush3.msra.mxu0 %v4061_v34  ;;  %3122 = vmatpush3.msra.mxu1 %v4107_v53 }
 0x143   :  { %3080 = vmatprep.subr.mxu0 %v3655_v0  ;;  %3123 = vmatprep.subr.mxu1 %v3655_v0 }
 0x144   :  { %3081 = vmatpush3.msra.mxu0 %v4076_v41  ;;  %3124 = vmatpush3.msra.mxu1 %v4120_v2 }
 0x145   :  { %3082 = vmatprep.subr.mxu0 %v3655_v0  ;;  %3125 = vmatprep.subr.mxu1 %v3655_v0 }
 0x146   :  { %3083 = vmatpush3.msra.mxu0 %v4094_v48  ;;  %3126 = vmatpush3.msra.mxu1 %v4138_v14 }
 0x147   :  { %3084 = vmatprep.subr.mxu0 %v3655_v0  ;;  %3127 = vmatprep.subr.mxu1 %v3655_v0 }
 0x148   :  { %3085 = vmatpush3.msra.mxu0 %v4105_v52  ;;  %3128 = vmatpush3.msra.mxu1 %v4154_v30 }
 0x149   :  { %3086 = vmatprep.subr.mxu0 %v3655_v0  ;;  %3129 = vmatprep.subr.mxu1 %v3655_v0 }
 0x14a   :  { %3087 = vmatpush3.msra.mxu0 %v4118_v61  ;;  %3130 = vmatpush3.msra.mxu1 %v4165_v38 }
 0x14b   :  { %3088 = vmatprep.subr.mxu0 %v3655_v0  ;;  %3132 = vmatmul.mubr.f32.vlgmr.msra.gmra.mxu1 %v740_v8  ;;  %v4438_v8 = vsub.f32 %v1310_v44, %v4429_v3 }
 0x14c   :  { %3169 = vmatprep.subr.mxu1 %v3655_v0  ;;  %3089 = vmatpush3.msra.mxu0 %v4136_v13 }
 0x14d   :  { %3170 = vmatpush3.msra.mxu1 %v3958_v57  ;;  %3090 = vmatprep.subr.mxu0 %v3655_v0  ;;  %v4989_v57 = vand.u32 4294901760, %v4136_v13 }
 0x14e   :  { %3171 = vmatprep.subr.mxu1 %v3655_v0  ;;  %3091 = vmatpush3.msra.mxu0 %v4151_v26 }
 0x14f   :  { %3172 = vmatpush3.msra.mxu1 %v3966_v60  ;;  %3092 = vmatprep.subr.mxu0 %v3655_v0  ;;  %v4991_v60 = vand.u32 4294901760, %v4169_v39 }
 0x150   :  { %3173 = vmatprep.subr.mxu1 %v3655_v0  ;;  %3093 = vmatpush3.msra.mxu0 %v4169_v39  ;;  %v1312_v39 = vld [vmem:[#allocation7 + $0x18] sm:$0xff] }
 0x151   :  { %3174 = vmatpush3.msra.mxu1 %v3977_v1  ;;  %3094 = vmatprep.subr.mxu0 %v3655_v0  ;;  %v1315_v1 = vld [vmem:[#allocation7 + $0x30] sm:$0xff]  ;;  %v4416_v49 = vand.u32 4294901760, %v1312_v39 }
 0x152   :  { %3175 = vmatprep.subr.mxu1 %v3655_v0  ;;  %3095 = vmatpush3.msra.mxu0 %v4177_v45 }
 0x153   :  { %3096 = vmatprep.mubr.msk.f32.mxu0 %vm3656_vm0, %v3655_v0  ;;  %3176 = vmatpush3.msra.mxu1 %v3991_v6  ;;  %v4367_v6 = vand.u32 4294901760, %v1315_v1  ;;  %v4419_v32 = vsub.f32 %v1312_v39, %v4416_v49 }
 0x154   :  { %3097 = vmatmul.mubr.f32.vlgmr.msra.gmra.mxu0 %v4201_v31  ;;  %3134 = vmatprep.subr.mxu0 %v3655_v0  ;;  %v1464_v31 = vand.u32 4294901760, %v4427_v56 }
 0x155   :  { %3177 = vmatprep.subr.mxu1 %v3655_v0  ;;  %3135 = vmatpush3.msra.mxu0 %v751_v62  ;;  %v4992_v62 = vand.u32 4294901760, %v4177_v45  ;;  %v1457_v55 = vand.u32 4294901760, %v4419_v32 }
 0x156   :  { %3178 = vmatpush3.msra.mxu1 %v4006_v12  ;;  %3136 = vmatprep.subr.mxu0 %v3655_v0  ;;  %v4371_v12 = vand.u32 4294901760, %v1313_v11 }
 0x157   :  { %3179 = vmatprep.subr.mxu1 %v3655_v0  ;;  %3137 = vmatpush3.msra.mxu0 %v758_v4  ;;  %v1314_v4 = vld [vmem:[#allocation7 + $0x28] sm:$0xff] }
 0x158   :  { %3180 = vmatpush3.msra.mxu1 %v4016_v17  ;;  %3138 = vmatprep.subr.mxu0 %v3655_v0  ;;  %v4377_v17 = vsub.f32 %v1315_v1, %v4367_v6  ;;  %v4384_v22 = vsub.f32 %v1313_v11, %v4371_v12 }
 0x159   :  { %3181 = vmatprep.subr.mxu1 %v3655_v0  ;;  %3139 = vmatpush3.msra.mxu0 %v765_v10  ;;  %v4369_v10 = vand.u32 4294901760, %v1314_v4 }
 0x15a   :  { %3182 = vmatpush3.msra.mxu1 %v4032_v23  ;;  %3140 = vmatprep.subr.mxu0 %v3655_v0  ;;  %v1450_v28 = vand.u32 4294901760, %v4384_v22 }
 0x15b   :  { %3183 = vmatprep.subr.mxu1 %v3655_v0  ;;  %3141 = vmatpush3.msra.mxu0 %v772_v16  ;;  %v4374_v16 = vsub.f32 %v1316_v63, %v4365_v5  ;;  %v4380_v18 = vsub.f32 %v1314_v4, %v4369_v10 }
 0x15c   :  { %3184 = vmatpush3.msra.mxu1 %v4045_v29  ;;  %3142 = vmatprep.subr.mxu0 %v3655_v0  ;;  %v1451_v41 = vsub.f32 %v4384_v22, %v1450_v28 }
 0x15d   :  { %3185 = vmatprep.subr.mxu1 %v3655_v0  ;;  %3143 = vmatpush3.msra.mxu0 %v779_v24  ;;  %v1429_v23 = vand.u32 4294901760, %v4374_v16  ;;  %v1436_v24 = vand.u32 4294901760, %v4377_v17 }
 0x15e   :  { %3186 = vmatpush3.msra.mxu1 %v4063_v35  ;;  %3144 = vmatprep.subr.mxu0 %v3655_v0 }
 0x15f   :  { %3187 = vmatprep.subr.mxu1 %v3655_v0  ;;  %3145 = vmatpush3.msra.mxu0 %v786_v27  ;;  %v1443_v27 = vand.u32 4294901760, %v4380_v18  ;;  %v1430_v29 = vsub.f32 %v4374_v16, %v1429_v23 }
 0x160   :  { %3188 = vmatpush3.msra.mxu1 %v4079_v42  ;;  %3146 = vmatprep.subr.mxu0 %v3655_v0 }
 0x161   :  { %3189 = vmatprep.subr.mxu1 %v3655_v0  ;;  %3147 = vmatpush3.msra.mxu0 %v793_v33  ;;  %v1437_v33 = vsub.f32 %v4377_v17, %v1436_v24  ;;  %v1444_v34 = vsub.f32 %v4380_v18, %v1443_v27  ;;  %v1431_v35 = vand.u32 4294901760, %v1430_v29 }
 0x162   :  { %3190 = vmatpush3.msra.mxu1 %v4090_v47  ;;  %3148 = vmatprep.subr.mxu0 %v3655_v0 }
 0x163   :  { %3191 = vmatprep.subr.mxu1 %v3655_v0  ;;  %3149 = vmatpush3.msra.mxu0 %v800_v40  ;;  %v1438_v40 = vand.u32 4294901760, %v1437_v33  ;;  %v1445_v42 = vand.u32 4294901760, %v1444_v34 }
 0x164   :  { %3192 = vmatpush3.msra.mxu1 %v4107_v53  ;;  %3150 = vmatprep.subr.mxu0 %v3655_v0 }
 0x165   :  { %3193 = vmatprep.subr.mxu1 %v3655_v0  ;;  %3151 = vmatpush3.msra.mxu0 %v807_v46  ;;  %v1452_v46 = vand.u32 4294901760, %v1451_v41 }
 0x166   :  { %3194 = vmatpush3.msra.mxu1 %v4120_v2  ;;  %3152 = vmatprep.subr.mxu0 %v3655_v0 }
 0x167   :  { %3195 = vmatprep.subr.mxu1 %v3655_v0  ;;  %3153 = vmatpush3.msra.mxu0 %v814_v54 }
 0x168   :  { %3196 = vmatpush3.msra.mxu1 %v4138_v14  ;;  %3154 = vmatprep.subr.mxu0 %v3655_v0 }
 0x169   :  { %3197 = vmatprep.subr.mxu1 %v3655_v0  ;;  %3155 = vmatpush3.msra.mxu0 %v821_v58 }
 0x16a   :  { %3198 = vmatpush3.msra.mxu1 %v4154_v30  ;;  %3156 = vmatprep.subr.mxu0 %v3655_v0 }
 0x16b   :  { %3199 = vmatprep.subr.mxu1 %v3655_v0  ;;  %3157 = vmatpush3.msra.mxu0 %v828_v9  ;;  %v2565_v9 = vld [vmem:[%s4974_s5] ss:$0 sm:$0xff]  ;;  %s3657_s5 = smov 64  }
 0x16c   :  { %3200 = vmatpush3.msra.mxu1 %v4165_v38  ;;  %3201 = vmatprep.mubr.msk.f32.mxu1 %vm3656_vm0, %v3655_v0 }
 0x16d   :  { %3158 = vmatprep.subr.mxu0 %v3655_v0  ;;  %3202 = vmatmul.mubr.f32.vlgmr.msra.gmra.mxu1 %v4198_v20 }
 0x16e   :  { %3159 = vmatpush3.msra.mxu0 %v4989_v57  ;;  %3166 = vmatprep.mubr.msk.f32.mxu0 %vm3656_vm0, %v3655_v0 }
 0x16f   :  { %3160 = vmatprep.subr.mxu0 %v3655_v0  ;;  %3223 = vmatprep.subr.mxu1 %v3655_v0 }
 0x170   :  { %3161 = vmatpush3.msra.mxu0 %v4990_v59  ;;  %3239 = vmatprep.mubr.msk.f32.mxu1 %vm3656_vm0, %v3655_v0  ;;  %v1465_v59 = vsub.f32 %v4427_v56, %v1464_v31 }
 0x171   :  { %3162 = vmatprep.subr.mxu0 %v3655_v0  ;;  %3224 = vmatpush3.msra.mxu1 %v1431_v35  ;;  %v1302_v35 = vld [vmem:[#allocation5] sm:$0xff] }
 0x172   :  { %3163 = vmatpush3.msra.mxu0 %v4991_v60  ;;  %3225 = vmatprep.subr.mxu1 %v3655_v0  ;;  %v1471_v60 = vand.u32 4294901760, %v4438_v8  ;;  %v1466_v63 = vand.u32 4294901760, %v1465_v59 }
 0x173   :  { %3164 = vmatprep.subr.mxu0 %v3655_v0  ;;  %3226 = vmatpush3.msra.mxu1 %v1438_v40 }
 0x174   :  { %3165 = vmatpush3.msra.mxu0 %v4992_v62  ;;  %3227 = vmatprep.subr.mxu1 %v3655_v0  ;;  %v4449_v62 = vsub.f32 %v1309_v7, %v4441_v37  ;;  %v1472_v1 = vsub.f32 %v4438_v8, %v1471_v60 }
 0x175   :  { %3167 = vmatmul.mubr.f32.vlgmr.msra.gmra.mxu0 %v4198_v20  ;;  %3204 = vmatprep.subr.mxu0 %v3655_v0  ;;  %v1458_v20 = vsub.f32 %v4419_v32, %v1457_v55 }
 0x176   :  { %3220 = vmatprep.mubr.msk.f32.mxu0 %vm3656_vm0, %v3655_v0  ;;  %3205 = vmatpush3.msra.mxu0 %v4365_v5  ;;  %v1478_v4 = vand.u32 4294901760, %v4449_v62  ;;  %v1473_v11 = vand.u32 4294901760, %v1472_v1 }
 0x177   :  { %3206 = vmatprep.subr.mxu0 %v3655_v0  ;;  %3228 = vmatpush3.msra.mxu1 %v1445_v42  ;;  %v1459_v57 = vand.u32 4294901760, %v1458_v20 }
 0x178   :  { %3207 = vmatpush3.msra.mxu0 %v4367_v6  ;;  %3229 = vmatprep.subr.mxu1 %v3655_v0  ;;  %v1479_v29 = vsub.f32 %v4449_v62, %v1478_v4 }
 0x179   :  { %3208 = vmatprep.subr.mxu0 %v3655_v0  ;;  %3230 = vmatpush3.msra.mxu1 %v1452_v46 }
 0x17a   :  { %3209 = vmatpush3.msra.mxu0 %v4369_v10  ;;  %3231 = vmatprep.subr.mxu1 %v3655_v0  ;;  %v1480_v33 = vand.u32 4294901760, %v1479_v29  ;;  %v1870_v29 = vld [vmem:[%s4977_s8 + $0x28] sm:$0xff] }
 0x17b   :  { %3210 = vmatprep.subr.mxu0 %v3655_v0  ;;  %3232 = vmatpush3.msra.mxu1 %v1459_v57 }
 0x17c   :  { %3211 = vmatpush3.msra.mxu0 %v4371_v12  ;;  %3233 = vmatprep.subr.mxu1 %v3655_v0 }
 0x17d   :  { %3212 = vmatprep.subr.mxu0 %v3655_v0  ;;  %3234 = vmatpush3.msra.mxu1 %v1466_v63 }
 0x17e   :  { %3213 = vmatpush3.msra.mxu0 %v4416_v49  ;;  %3235 = vmatprep.subr.mxu1 %v3655_v0 }
 0x17f   :  { %3214 = vmatprep.subr.mxu0 %v3655_v0  ;;  %3236 = vmatpush3.msra.mxu1 %v1473_v11 }
 0x180   :  { %3215 = vmatpush3.msra.mxu0 %v4421_v36  ;;  %3237 = vmatprep.subr.mxu1 %v3655_v0 }
 0x181   :  { %3216 = vmatprep.subr.mxu0 %v3655_v0  ;;  %3238 = vmatpush3.msra.mxu1 %v1480_v33 }
 0x182   :  { %3217 = vmatpush3.msra.mxu0 %v4429_v3  ;;  %3261 = vmatprep.subr.mxu1 %v3655_v0 }
 0x183   :  { %3218 = vmatprep.subr.mxu0 %v3655_v0 }
 0x184   :  { %3219 = vmatpush3.msra.mxu0 %v4441_v37 }
 0x185   :  { %3242 = vmatprep.subr.mxu0 %v3655_v0 }
 0x1eb   :  { %v895_v47 = vpop.f32.mrf.mxu1 }
 0x1ed   :  { %v3063_v48 = vpop.f32.mrf.mxu1 }
 0x1f3   :  { %v744_v52 = vpop.f32.mrf.mxu0 }
 0x1f4   :  { %v745_v13 = vadd.f32 %v2565_v9, %v744_v52 }
 0x1f5   :  { %v3028_v53 = vpop.f32.mrf.mxu0 }
 0x1f6   :  { %v896_v26 = vadd.f32 %v895_v47, %v745_v13 }
 0x20b   :  { %v1088_v54 = vpop.f32.mrf.mxu1 }
 0x20d   :  { %v3133_v58 = vpop.f32.mrf.mxu1 }
 0x214   :  { %v999_v61 = vpop.f32.mrf.mxu0 }
 0x215   :  { %v1000_v38 = vadd.f32 %v999_v61, %v896_v26 }
 0x216   :  { %v3098_v2 = vpop.f32.mrf.mxu0 }
 0x217   :  { %v1089_v45 = vadd.f32 %v1088_v54, %v1000_v38  ;;  %v1876_v2 = vld [vmem:[%s4977_s8 + $0x58] sm:$0xff]  ;;  %v1875_v38 = vld [vmem:[%s4977_s8 + $0x50] sm:$0xff] }
 0x22d   :  { %v1294_v14 = vpop.f32.mrf.mxu1 }
 0x22f   :  { %v3203_v30 = vpop.f32.mrf.mxu1 }
 0x230   :  { %v4606_v30 = vand.u32 4294901760, %v1876_v2 }
 0x232   :  { %v4620_v19 = vsub.f32 %v1876_v2, %v4606_v30  ;;  %v1867_v2 = vld [vmem:[%s4977_s8 + $0x10] sm:$0xff] }
 0x235   :  { %v1207_v51 = vpop.f32.mrf.mxu0 }
 0x236   :  { %v1208_v21 = vadd.f32 %v1207_v51, %v1089_v45  ;;  %v4616_v51 = vand.u32 4294901760, %v1875_v38 }
 0x237   :  { %v3168_v43 = vpop.f32.mrf.mxu0 }
 0x238   :  { %v1295_v50 = vadd.f32 %v1294_v14, %v1208_v21  ;;  %v1874_v21 = vld [vmem:[%s4977_s8 + $0x48] sm:$0xff]  ;;  %v4630_v43 = vsub.f32 %v1875_v38, %v4616_v51 }
 0x239   :  { %v4632_v44 = vand.u32 4294901760, %v1874_v21 }
 0x23a   :  { %v1299_v15 = vmul.f32 0.5, %v1295_v50  ;;  %1298 = vst [vmem:[#allocation9] sm:$0xff] %v1295_v50 }
 0x23b   :  { %v4643_v7 = vsub.f32 %v1874_v21, %v4632_v44  ;;  %v1866_v21 = vld [vmem:[%s4977_s8 + $0x8] sm:$0xff] }
 0x23c   :  { %v1300_v25 = vmul.f32 1.442695, %v1299_v15 }
 0x23e   :  { %3538 = vpow2.f32 %v1300_v25 }
 0x24b   :  { %v3539_v34 = vpop.eup %3538 }
 0x24c   :  { %1304 = vrot.lane.b32.xlu0 %v3539_v34, %s3657_s5 }
 0x2be   :  { %v1305_v40 = vpop.permute.xlu0 %1304 }
 0x2bf   :  { %v1307_v41 = vmul.f32 %v1305_v40, %v1302_v35  ;;  %v4690_v40 = vand.u32 4294901760, %v1870_v29 }
 0x2c1   :  { %v1308_v42 = vadd.f32 %v1307_v41, %v1295_v50  ;;  %v2010_v50 = vand.u32 4294901760, %v4620_v19 }
 0x2c3   :  { %v1325_v46 = vsel %vm92_vm1, %v1308_v42, 0  ;;  %v2011_v20 = vsub.f32 %v4620_v19, %v2010_v50  ;;  %v1869_v42 = vld [vmem:[%s4977_s8 + $0x20] sm:$0xff] }
 0x2c4   :  { %v4465_v47 = vand.u32 4294901760, %v1325_v46 }
 0x2c5   :  { %v2012_v59 = vand.u32 4294901760, %v2011_v20  ;;  %v4754_v20 = vand.u32 4294901760, %v1866_v21 }
 0x2c6   :  { %v1401_v48 = vsub.f32 %v1325_v46, %v4465_v47  ;;  %3240 = vmatmul.mubr.f32.vlgmr.msra.gmra.mxu1 %v4465_v47 }
 0x2c7   :  { %3262 = vmatpush3.msra.mxu1 %v4365_v5  ;;  %3277 = vmatprep.mubr.msk.f32.mxu1 %vm3656_vm0, %v3655_v0 }
 0x2c8   :  { %3263 = vmatprep.subr.mxu1 %v3655_v0  ;;  %v1402_v52 = vand.u32 4294901760, %v1401_v48 }
 0x2c9   :  { %3264 = vmatpush3.msra.mxu1 %v4367_v6 }
 0x2ca   :  { %3265 = vmatprep.subr.mxu1 %v3655_v0  ;;  %v1403_v53 = vsub.f32 %v1401_v48, %v1402_v52 }
 0x2cb   :  { %3266 = vmatpush3.msra.mxu1 %v4369_v10 }
 0x2cc   :  { %3267 = vmatprep.subr.mxu1 %v3655_v0  ;;  %v1404_v54 = vand.u32 4294901760, %v1403_v53 }
 0x2cd   :  { %3268 = vmatpush3.msra.mxu1 %v4371_v12 }
 0x2ce   :  { %3269 = vmatprep.subr.mxu1 %v3655_v0  ;;  %3221 = vmatmul.mubr.f32.vlgmr.msra.gmra.mxu0 %v1404_v54  ;;  %v1868_v54 = vld [vmem:[%s4977_s8 + $0x18] sm:$0xff] }
 0x2cf   :  { %3243 = vmatpush3.msra.mxu0 %v4374_v16  ;;  %3270 = vmatpush3.msra.mxu1 %v4416_v49 }
 0x2d0   :  { %3244 = vmatprep.subr.mxu0 %v3655_v0  ;;  %3271 = vmatprep.subr.mxu1 %v3655_v0 }
 0x2d1   :  { %3245 = vmatpush3.msra.mxu0 %v4377_v17  ;;  %3272 = vmatpush3.msra.mxu1 %v4421_v36  ;;  %v1878_v17 = vld [vmem:[%s4977_s8 + $0x68] sm:$0xff] }
 0x2d2   :  { %3246 = vmatprep.subr.mxu0 %v3655_v0  ;;  %3273 = vmatprep.subr.mxu1 %v3655_v0 }
 0x2d3   :  { %3247 = vmatpush3.msra.mxu0 %v4380_v18  ;;  %3274 = vmatpush3.msra.mxu1 %v4429_v3 }
 0x2d4   :  { %3248 = vmatprep.subr.mxu0 %v3655_v0  ;;  %3275 = vmatprep.subr.mxu1 %v3655_v0 }
 0x2d5   :  { %3249 = vmatpush3.msra.mxu0 %v4384_v22  ;;  %3276 = vmatpush3.msra.mxu1 %v4441_v37 }
 0x2d6   :  { %3250 = vmatprep.subr.mxu0 %v3655_v0  ;;  %3278 = vmatmul.mubr.f32.vlgmr.msra.gmra.mxu1 %v1402_v52  ;;  %v4707_v52 = vand.u32 4294901760, %v1869_v42 }
 0x2d7   :  { %3299 = vmatprep.subr.mxu1 %v3655_v0  ;;  %3251 = vmatpush3.msra.mxu0 %v4419_v32 }
 0x2d8   :  { %3300 = vmatpush3.msra.mxu1 %v4365_v5  ;;  %3252 = vmatprep.subr.mxu0 %v3655_v0  ;;  %v1880_v5 = vld [vmem:[%s4977_s8 + $0x78] sm:$0xff] }
 0x2d9   :  { %3301 = vmatprep.subr.mxu1 %v3655_v0  ;;  %3253 = vmatpush3.msra.mxu0 %v4427_v56 }
 0x2da   :  { %3302 = vmatpush3.msra.mxu1 %v4367_v6  ;;  %3254 = vmatprep.subr.mxu0 %v3655_v0  ;;  %v4558_v6 = vand.u32 4294901760, %v1880_v5 }
 0x2db   :  { %3303 = vmatprep.subr.mxu1 %v3655_v0  ;;  %3255 = vmatpush3.msra.mxu0 %v4438_v8 }
 0x2dc   :  { %3304 = vmatpush3.msra.mxu1 %v4369_v10  ;;  %3256 = vmatprep.subr.mxu0 %v3655_v0  ;;  %v1879_v10 = vld [vmem:[%s4977_s8 + $0x70] sm:$0xff] }
 0x2dd   :  { %3305 = vmatprep.subr.mxu1 %v3655_v0  ;;  %3257 = vmatpush3.msra.mxu0 %v4449_v62  ;;  %v4566_v16 = vand.u32 4294901760, %v1879_v10 }
 0x2de   :  { %3258 = vmatprep.mubr.msk.f32.mxu0 %vm3656_vm0, %v3655_v0  ;;  %3306 = vmatpush3.msra.mxu1 %v4371_v12  ;;  %v4564_v12 = vsub.f32 %v1880_v5, %v4558_v6 }
 0x2df   :  { %3259 = vmatmul.mubr.f32.vlgmr.msra.gmra.mxu0 %v1401_v48  ;;  %3280 = vmatprep.subr.mxu0 %v3655_v0  ;;  %v4575_v22 = vsub.f32 %v1879_v10, %v4566_v16  ;;  %v4705_v48 = vsub.f32 %v1870_v29, %v4690_v40 }
 0x2e0   :  { %3307 = vmatprep.subr.mxu1 %v3655_v0  ;;  %3281 = vmatpush3.msra.mxu0 %v1429_v23  ;;  %v1982_v18 = vand.u32 4294901760, %v4564_v12  ;;  %v4577_v23 = vand.u32 4294901760, %v1878_v17 }
 0x2e1   :  { %3308 = vmatpush3.msra.mxu1 %v4416_v49  ;;  %3282 = vmatprep.subr.mxu0 %v3655_v0  ;;  %v2052_v10 = vand.u32 4294901760, %v4705_v48 }
 0x2e2   :  { %3309 = vmatprep.subr.mxu1 %v3655_v0  ;;  %3283 = vmatpush3.msra.mxu0 %v1436_v24  ;;  %v1877_v24 = vld [vmem:[%s4977_s8 + $0x60] sm:$0xff]  ;;  %v4589_v58 = vsub.f32 %v1878_v17, %v4577_v23  ;;  %v4718_v17 = vsub.f32 %v1869_v42, %v4707_v52 }
 0x2e3   :  { %3310 = vmatpush3.msra.mxu1 %v4421_v36  ;;  %3284 = vmatprep.subr.mxu0 %v3655_v0  ;;  %v4591_v61 = vand.u32 4294901760, %v1877_v24 }
 0x2e4   :  { %3311 = vmatprep.subr.mxu1 %v3655_v0  ;;  %3285 = vmatpush3.msra.mxu0 %v1443_v27  ;;  %v1983_v27 = vsub.f32 %v4564_v12, %v1982_v18  ;;  %v1996_v14 = vand.u32 4294901760, %v4589_v58 }
 0x2e5   :  { %3312 = vmatpush3.msra.mxu1 %v4429_v3  ;;  %3286 = vmatprep.subr.mxu0 %v3655_v0  ;;  %v4603_v26 = vsub.f32 %v1877_v24, %v4591_v61  ;;  %v2017_v3 = vand.u32 4294901760, %v4630_v43  ;;  %v4720_v24 = vand.u32 4294901760, %v1868_v54 }
 0x2e6   :  { %3313 = vmatprep.subr.mxu1 %v3655_v0  ;;  %3287 = vmatpush3.msra.mxu0 %v1450_v28  ;;  %v1989_v28 = vand.u32 4294901760, %v4575_v22  ;;  %v1984_v9 = vand.u32 4294901760, %v1983_v27  ;;  %v1997_v45 = vsub.f32 %v4589_v58, %v1996_v14 }
 0x2e7   :  { %3314 = vmatpush3.msra.mxu1 %v4441_v37  ;;  %3315 = vmatprep.mubr.msk.f32.mxu1 %vm3656_vm0, %v3655_v0  ;;  %v2003_v49 = vand.u32 4294901760, %v4603_v26  ;;  %v2018_v8 = vsub.f32 %v4630_v43, %v2017_v3  ;;  %v2024_v37 = vand.u32 4294901760, %v4643_v7  ;;  %v4736_v38 = vsub.f32 %v1868_v54, %v4720_v24 }
 0x2e8   :  { %3288 = vmatprep.subr.mxu0 %v3655_v0  ;;  %3316 = vmatmul.mubr.f32.vlgmr.msra.gmra.mxu1 %v4465_v47  ;;  %v1990_v13 = vsub.f32 %v4575_v22, %v1989_v28  ;;  %v1998_v32 = vand.u32 4294901760, %v1997_v45 }
 0x2e9   :  { %3289 = vmatpush3.msra.mxu0 %v1457_v55  ;;  %3296 = vmatprep.mubr.msk.f32.mxu0 %vm3656_vm0, %v3655_v0  ;;  %v2004_v36 = vsub.f32 %v4603_v26, %v2003_v49  ;;  %v1873_v55 = vld [vmem:[%s4977_s8 + $0x40] sm:$0xff]  ;;  %v2019_v62 = vand.u32 4294901760, %v2018_v8  ;;  %v2025_v63 = vsub.f32 %v4643_v7, %v2024_v37 }
 0x2ea   :  { %3290 = vmatprep.subr.mxu0 %v3655_v0  ;;  %3353 = vmatprep.subr.mxu1 %v3655_v0  ;;  %v1991_v39 = vand.u32 4294901760, %v1990_v13  ;;  %v4645_v15 = vand.u32 4294901760, %v1873_v55  ;;  %v2059_v13 = vand.u32 4294901760, %v4718_v17 }
 0x2eb   :  { %3291 = vmatpush3.msra.mxu0 %v1464_v31  ;;  %3385 = vmatprep.mubr.msk.f32.mxu1 %vm3656_vm0, %v3655_v0  ;;  %v2005_v56 = vand.u32 4294901760, %v2004_v36  ;;  %v1872_v31 = vld [vmem:[%s4977_s8 + $0x38] sm:$0xff]  ;;  %v2026_v33 = vand.u32 4294901760, %v2025_v63  ;;  %v4769_v63 = vsub.f32 %v1866_v21, %v4754_v20 }
 0x2ec   :  { %3292 = vmatprep.subr.mxu0 %v3655_v0  ;;  %3354 = vmatpush3.msra.mxu1 %v1984_v9  ;;  %v4661_v25 = vsub.f32 %v1873_v55, %v4645_v15  ;;  %v4663_v57 = vand.u32 4294901760, %v1872_v31  ;;  %v2053_v9 = vsub.f32 %v4705_v48, %v2052_v10  ;;  %v2060_v36 = vsub.f32 %v4718_v17, %v2059_v13 }
 0x2ed   :  { %3293 = vmatpush3.msra.mxu0 %v1471_v60  ;;  %3355 = vmatprep.subr.mxu1 %v3655_v0  ;;  %v1871_v60 = vld [vmem:[%s4977_s8 + $0x30] sm:$0xff]  ;;  %v4988_v55 = vand.u32 4294901760, %v4736_v38  ;;  %v4986_v42 = vand.u32 4294901760, %v4769_v63 }
 0x2ee   :  { %3294 = vmatprep.subr.mxu0 %v3655_v0  ;;  %3356 = vmatpush3.msra.mxu1 %v1991_v39  ;;  %v2031_v1 = vand.u32 4294901760, %v4661_v25  ;;  %v4679_v11 = vand.u32 4294901760, %v1871_v60  ;;  %v4738_v39 = vand.u32 4294901760, %v1867_v2  ;;  %v2061_v8 = vand.u32 4294901760, %v2060_v36 }
 0x2ef   :  { %3295 = vmatpush3.msra.mxu0 %v1478_v4  ;;  %3357 = vmatprep.subr.mxu1 %v3655_v0  ;;  %v4676_v4 = vsub.f32 %v1872_v31, %v4663_v57  ;;  %v1865_v31 = vld [vmem:[%s4977_s8] sm:$0xff]  ;;  %v2081_v54 = vsub.f32 %v4769_v63, %v4986_v42 }
 0x2f0   :  { %3297 = vmatmul.mubr.f32.vlgmr.msra.gmra.mxu0 %v4465_v47  ;;  %3318 = vmatprep.subr.mxu0 %v3655_v0  ;;  %v2032_v34 = vsub.f32 %v4661_v25, %v2031_v1  ;;  %v4694_v41 = vsub.f32 %v1871_v60, %v4679_v11 }
 0x2f1   :  { %3350 = vmatprep.mubr.msk.f32.mxu0 %vm3656_vm0, %v3655_v0  ;;  %3319 = vmatpush3.msra.mxu0 %v4558_v6  ;;  %v2038_v35 = vand.u32 4294901760, %v4676_v4 }
 0x2f2   :  { %3320 = vmatprep.subr.mxu0 %v3655_v0  ;;  %3358 = vmatpush3.msra.mxu1 %v1998_v32  ;;  %v2033_v46 = vand.u32 4294901760, %v2032_v34  ;;  %v2045_v53 = vand.u32 4294901760, %v4694_v41  ;;  %v2054_v32 = vand.u32 4294901760, %v2053_v9 }
 0x2f3   :  { %3321 = vmatpush3.msra.mxu0 %v4566_v16  ;;  %3359 = vmatprep.subr.mxu1 %v3655_v0  ;;  %v2039_v47 = vsub.f32 %v4676_v4, %v2038_v35 }
 0x2f4   :  { %3322 = vmatprep.subr.mxu0 %v3655_v0  ;;  %3360 = vmatpush3.msra.mxu1 %v2005_v56  ;;  %v2046_v27 = vsub.f32 %v4694_v41, %v2045_v53  ;;  %v4751_v56 = vsub.f32 %v1867_v2, %v4738_v39 }
 0x2f5   :  { %3323 = vmatpush3.msra.mxu0 %v4577_v23  ;;  %3361 = vmatprep.subr.mxu1 %v3655_v0  ;;  %v2040_v5 = vand.u32 4294901760, %v2039_v47 }
 0x2f6   :  { %3324 = vmatprep.subr.mxu0 %v3655_v0  ;;  %3362 = vmatpush3.msra.mxu1 %v2012_v59  ;;  %v2047_v45 = vand.u32 4294901760, %v2046_v27  ;;  %v2067_v59 = vsub.f32 %v4736_v38, %v4988_v55  ;;  %v4987_v60 = vand.u32 4294901760, %v4751_v56  ;;  %v2082_v27 = vand.u32 4294901760, %v2081_v54 }
 0x2f7   :  { %3325 = vmatpush3.msra.mxu0 %v4591_v61  ;;  %3363 = vmatprep.subr.mxu1 %v3655_v0 }
 0x2f8   :  { %3326 = vmatprep.subr.mxu0 %v3655_v0  ;;  %3364 = vmatpush3.msra.mxu1 %v2019_v62  ;;  %v4765_v62 = vand.u32 4294901760, %v1865_v31  ;;  %v2068_v29 = vand.u32 4294901760, %v2067_v59 }
 0x2f9   :  { %3327 = vmatpush3.msra.mxu0 %v4606_v30  ;;  %3365 = vmatprep.subr.mxu1 %v3655_v0 }
 0x2fa   :  { %3328 = vmatprep.subr.mxu0 %v3655_v0  ;;  %3366 = vmatpush3.msra.mxu1 %v2026_v33  ;;  %v2074_v33 = vsub.f32 %v4751_v56, %v4987_v60  ;;  %v4777_v34 = vsub.f32 %v1865_v31, %v4765_v62 }
 0x2fb   :  { %3329 = vmatpush3.msra.mxu0 %v4616_v51  ;;  %3367 = vmatprep.subr.mxu1 %v3655_v0 }
 0x2fc   :  { %3330 = vmatprep.subr.mxu0 %v3655_v0  ;;  %3368 = vmatpush3.msra.mxu1 %v2033_v46  ;;  %v2075_v46 = vand.u32 4294901760, %v2074_v33  ;;  %v4985_v47 = vand.u32 4294901760, %v4777_v34 }
 0x2fd   :  { %3331 = vmatpush3.msra.mxu0 %v4632_v44  ;;  %3369 = vmatprep.subr.mxu1 %v3655_v0 }
 0x2fe   :  { %3332 = vmatprep.subr.mxu0 %v3655_v0  ;;  %3370 = vmatpush3.msra.mxu1 %v2040_v5  ;;  %v2088_v5 = vsub.f32 %v4777_v34, %v4985_v47 }
 0x2ff   :  { %3333 = vmatpush3.msra.mxu0 %v4645_v15  ;;  %3371 = vmatprep.subr.mxu1 %v3655_v0 }
 0x300   :  { %3334 = vmatprep.subr.mxu0 %v3655_v0  ;;  %3372 = vmatpush3.msra.mxu1 %v2047_v45  ;;  %v2089_v2 = vand.u32 4294901760, %v2088_v5 }
 0x301   :  { %3335 = vmatpush3.msra.mxu0 %v4663_v57  ;;  %3373 = vmatprep.subr.mxu1 %v3655_v0 }
 0x302   :  { %3336 = vmatprep.subr.mxu0 %v3655_v0  ;;  %3374 = vmatpush3.msra.mxu1 %v2054_v32 }
 0x303   :  { %3337 = vmatpush3.msra.mxu0 %v4679_v11  ;;  %3375 = vmatprep.subr.mxu1 %v3655_v0 }
 0x304   :  { %3338 = vmatprep.subr.mxu0 %v3655_v0  ;;  %3376 = vmatpush3.msra.mxu1 %v2061_v8 }
 0x305   :  { %3339 = vmatpush3.msra.mxu0 %v4690_v40  ;;  %3377 = vmatprep.subr.mxu1 %v3655_v0 }
 0x306   :  { %3340 = vmatprep.subr.mxu0 %v3655_v0  ;;  %3378 = vmatpush3.msra.mxu1 %v2068_v29  ;;  %v2566_v29 = vld [vmem:[%s4976_s7] ss:$0 sm:$0xff]  ;;  %s3658_s7 = smov [#allocation9]  }
 0x307   :  { %3341 = vmatpush3.msra.mxu0 %v4707_v52  ;;  %3379 = vmatprep.subr.mxu1 %v3655_v0  ;;  %s2550_s23 = sshll.u32 %s3658_s7, 4  ;;  %s2551_s23 = int_to_ptr.vmem [resolvable:$true] %s2550_s23 }
 0x308   :  { %3342 = vmatprep.subr.mxu0 %v3655_v0  ;;  %3380 = vmatpush3.msra.mxu1 %v2075_v46  ;;  %s3602_s24 = scalar_lea.vmem %s2551_s23, 128  ;;  %p3607_p2 = scmp.lt.s32.totalorder %s2551_s23, %s2551_s23 }
 0x309   :  { %3343 = vmatpush3.msra.mxu0 %v4720_v24  ;;  %3381 = vmatprep.subr.mxu1 %v3655_v0  ;;  %p3603_p1 = scmp.ne.s32.totalorder %s2551_s23, %s3602_s24  ;;  %p3608_p3 = scmp.lt.s32.totalorder %s3602_s24, %s3602_s24 }
 0x30a   :  { %3344 = vmatprep.subr.mxu0 %v3655_v0  ;;  %3382 = vmatpush3.msra.mxu1 %v2082_v27 }
 0x30b   :  { %3345 = vmatpush3.msra.mxu0 %v4738_v39  ;;  %3383 = vmatprep.subr.mxu1 %v3655_v0  ;;  %p3609_p4 = por %p3608_p3, %p3607_p2 }
 0x30c   :  { %3346 = vmatprep.subr.mxu0 %v3655_v0  ;;  %3384 = vmatpush3.msra.mxu1 %v2089_v2 }
 0x30d   :  { %3347 = vmatpush3.msra.mxu0 %v4754_v20  ;;  %3423 = vmatprep.subr.mxu1 %v3655_v0  ;;  %p3610_p5 = pnand %p3609_p4, %p3603_p1 }
 0x30e   :  { %3348 = vmatprep.subr.mxu0 %v3655_v0 }
 0x30f   :  { %3349 = vmatpush3.msra.mxu0 %v4765_v62 }
 0x310   :  { %3388 = vmatprep.subr.mxu0 %v3655_v0 }
 0x386   :  { %v1517_v9 = vpop.f32.mrf.mxu1 }
 0x388   :  { %v3241_v45 = vpop.f32.mrf.mxu1 }
 0x38e   :  { %v1406_v21 = vpop.f32.mrf.mxu0 }
 0x38f   :  { %v1407_v33 = vadd.f32 %v2566_v29, %v1406_v21 }
 0x390   :  { %v3222_v32 = vpop.f32.mrf.mxu0 }
 0x391   :  { %v1518_v54 = vadd.f32 %v1517_v9, %v1407_v33 }
 0x396   :  { %v1686_v36 = vpop.f32.mrf.mxu1 }
 0x398   :  { %v3279_v31 = vpop.f32.mrf.mxu1 }
 0x39f   :  { %v1605_v8 = vpop.f32.mrf.mxu0 }
 0x3a0   :  { %v1606_v27 = vadd.f32 %v1605_v8, %v1518_v54 }
 0x3a1   :  { %v3260_v59 = vpop.f32.mrf.mxu0 }
 0x3a2   :  { %v1687_v2 = vadd.f32 %v1686_v36, %v1606_v27 }
 0x3a8   :  { %v1860_v46 = vpop.f32.mrf.mxu1 }
 0x3aa   :  { %v3317_v5 = vpop.f32.mrf.mxu1 }
 0x3b0   :  { %v1781_v47 = vpop.f32.mrf.mxu0 }
 0x3b1   :  { %v1782_v42 = vadd.f32 %v1781_v47, %v1687_v2 }
 0x3b2   :  { %v3298_v60 = vpop.f32.mrf.mxu0 }
 0x3b3   :  { %v1861_v45 = vadd.f32 %v1860_v46, %v1782_v42 }
 0x3b5   :  { %v1864_v55 = vmax.f32 %v1861_v45, 0.0 }
 0x3b7   :  { %v4798_v32 = vand.u32 4294901760, %v1864_v55 }
 0x3b9   :  { %v4801_v31 = vsub.f32 %v1864_v55, %v4798_v32  ;;  %3386 = vmatmul.mubr.f32.vlgmr.msra.gmra.mxu1 %v4798_v32 }
 0x3ba   :  { %3424 = vmatpush3.msra.mxu1 %v4558_v6  ;;  %3455 = vmatprep.mubr.msk.f32.mxu1 %vm3656_vm0, %v3655_v0 }
 0x3bb   :  { %v1971_v9 = vand.u32 4294901760, %v4801_v31  ;;  %3425 = vmatprep.subr.mxu1 %v3655_v0 }
 0x3bc   :  { %3426 = vmatpush3.msra.mxu1 %v4566_v16 }
 0x3bd   :  { %3427 = vmatprep.subr.mxu1 %v3655_v0  ;;  %v1972_v60 = vsub.f32 %v4801_v31, %v1971_v9 }
 0x3be   :  { %3428 = vmatpush3.msra.mxu1 %v4577_v23 }
 0x3bf   :  { %3429 = vmatprep.subr.mxu1 %v3655_v0  ;;  %v1973_v55 = vand.u32 4294901760, %v1972_v60 }
 0x3c0   :  { %3430 = vmatpush3.msra.mxu1 %v4591_v61 }
 0x3c1   :  { %3431 = vmatprep.subr.mxu1 %v3655_v0  ;;  %3351 = vmatmul.mubr.f32.vlgmr.msra.gmra.mxu0 %v1973_v55 }
 0x3c2   :  { %3389 = vmatpush3.msra.mxu0 %v4564_v12  ;;  %3432 = vmatpush3.msra.mxu1 %v4606_v30  ;;  %v4994_v12 = vand.u32 4294901760, %v4751_v56 }
 0x3c3   :  { %3390 = vmatprep.subr.mxu0 %v3655_v0  ;;  %3433 = vmatprep.subr.mxu1 %v3655_v0 }
 0x3c4   :  { %3391 = vmatpush3.msra.mxu0 %v4575_v22  ;;  %3434 = vmatpush3.msra.mxu1 %v4616_v51 }
 0x3c5   :  { %3392 = vmatprep.subr.mxu0 %v3655_v0  ;;  %3435 = vmatprep.subr.mxu1 %v3655_v0 }
 0x3c6   :  { %3393 = vmatpush3.msra.mxu0 %v4589_v58  ;;  %3436 = vmatpush3.msra.mxu1 %v4632_v44 }
 0x3c7   :  { %3394 = vmatprep.subr.mxu0 %v3655_v0  ;;  %3437 = vmatprep.subr.mxu1 %v3655_v0 }
 0x3c8   :  { %3395 = vmatpush3.msra.mxu0 %v4603_v26  ;;  %3438 = vmatpush3.msra.mxu1 %v4645_v15 }
 0x3c9   :  { %3396 = vmatprep.subr.mxu0 %v3655_v0  ;;  %3439 = vmatprep.subr.mxu1 %v3655_v0 }
 0x3ca   :  { %3397 = vmatpush3.msra.mxu0 %v4620_v19  ;;  %3440 = vmatpush3.msra.mxu1 %v4663_v57 }
 0x3cb   :  { %3398 = vmatprep.subr.mxu0 %v3655_v0  ;;  %3441 = vmatprep.subr.mxu1 %v3655_v0 }
 0x3cc   :  { %3399 = vmatpush3.msra.mxu0 %v4630_v43  ;;  %3442 = vmatpush3.msra.mxu1 %v4679_v11 }
 0x3cd   :  { %3400 = vmatprep.subr.mxu0 %v3655_v0  ;;  %3443 = vmatprep.subr.mxu1 %v3655_v0 }
 0x3ce   :  { %3401 = vmatpush3.msra.mxu0 %v4643_v7  ;;  %3444 = vmatpush3.msra.mxu1 %v4690_v40 }
 0x3cf   :  { %3402 = vmatprep.subr.mxu0 %v3655_v0  ;;  %3445 = vmatprep.subr.mxu1 %v3655_v0 }
 0x3d0   :  { %3403 = vmatpush3.msra.mxu0 %v4661_v25  ;;  %3446 = vmatpush3.msra.mxu1 %v4707_v52 }
 0x3d1   :  { %3404 = vmatprep.subr.mxu0 %v3655_v0  ;;  %3447 = vmatprep.subr.mxu1 %v3655_v0 }
 0x3d2   :  { %3405 = vmatpush3.msra.mxu0 %v4676_v4  ;;  %3448 = vmatpush3.msra.mxu1 %v4720_v24 }
 0x3d3   :  { %3406 = vmatprep.subr.mxu0 %v3655_v0  ;;  %3449 = vmatprep.subr.mxu1 %v3655_v0 }
 0x3d4   :  { %3407 = vmatpush3.msra.mxu0 %v4694_v41  ;;  %3450 = vmatpush3.msra.mxu1 %v4738_v39 }
 0x3d5   :  { %3408 = vmatprep.subr.mxu0 %v3655_v0  ;;  %3451 = vmatprep.subr.mxu1 %v3655_v0 }
 0x3d6   :  { %3409 = vmatpush3.msra.mxu0 %v4705_v48  ;;  %3452 = vmatpush3.msra.mxu1 %v4754_v20 }
 0x3d7   :  { %3410 = vmatprep.subr.mxu0 %v3655_v0  ;;  %3453 = vmatprep.subr.mxu1 %v3655_v0 }
 0x3d8   :  { %3411 = vmatpush3.msra.mxu0 %v4718_v17  ;;  %3454 = vmatpush3.msra.mxu1 %v4765_v62 }
 0x3d9   :  { %3412 = vmatprep.subr.mxu0 %v3655_v0  ;;  %3456 = vmatmul.mubr.f32.vlgmr.msra.gmra.mxu1 %v1971_v9 }
 0x3da   :  { %3493 = vmatprep.subr.mxu1 %v3655_v0  ;;  %3413 = vmatpush3.msra.mxu0 %v4736_v38 }
 0x3db   :  { %3494 = vmatpush3.msra.mxu1 %v4558_v6  ;;  %3414 = vmatprep.subr.mxu0 %v3655_v0  ;;  %v4993_v6 = vand.u32 4294901760, %v4736_v38 }
 0x3dc   :  { %3495 = vmatprep.subr.mxu1 %v3655_v0  ;;  %3415 = vmatpush3.msra.mxu0 %v4751_v56 }
 0x3dd   :  { %3496 = vmatpush3.msra.mxu1 %v4566_v16  ;;  %3416 = vmatprep.subr.mxu0 %v3655_v0  ;;  %v4995_v16 = vand.u32 4294901760, %v4769_v63 }
 0x3de   :  { %3497 = vmatprep.subr.mxu1 %v3655_v0  ;;  %3417 = vmatpush3.msra.mxu0 %v4769_v63 }
 0x3df   :  { %3498 = vmatpush3.msra.mxu1 %v4577_v23  ;;  %3418 = vmatprep.subr.mxu0 %v3655_v0 }
 0x3e0   :  { %3499 = vmatprep.subr.mxu1 %v3655_v0  ;;  %3419 = vmatpush3.msra.mxu0 %v4777_v34 }
 0x3e1   :  { %3420 = vmatprep.mubr.msk.f32.mxu0 %vm3656_vm0, %v3655_v0  ;;  %3500 = vmatpush3.msra.mxu1 %v4591_v61 }
 0x3e2   :  { %3421 = vmatmul.mubr.f32.vlgmr.msra.gmra.mxu0 %v4801_v31  ;;  %3458 = vmatprep.subr.mxu0 %v3655_v0 }
 0x3e3   :  { %3501 = vmatprep.subr.mxu1 %v3655_v0  ;;  %3459 = vmatpush3.msra.mxu0 %v1982_v18  ;;  %v4996_v18 = vand.u32 4294901760, %v4777_v34 }
 0x3e4   :  { %3502 = vmatpush3.msra.mxu1 %v4606_v30  ;;  %3460 = vmatprep.subr.mxu0 %v3655_v0 }
 0x3e5   :  { %3503 = vmatprep.subr.mxu1 %v3655_v0  ;;  %3461 = vmatpush3.msra.mxu0 %v1989_v28 }
 0x3e6   :  { %3504 = vmatpush3.msra.mxu1 %v4616_v51  ;;  %3462 = vmatprep.subr.mxu0 %v3655_v0 }
 0x3e7   :  { %3505 = vmatprep.subr.mxu1 %v3655_v0  ;;  %3463 = vmatpush3.msra.mxu0 %v1996_v14 }
 0x3e8   :  { %3506 = vmatpush3.msra.mxu1 %v4632_v44  ;;  %3464 = vmatprep.subr.mxu0 %v3655_v0 }
 0x3e9   :  { %3507 = vmatprep.subr.mxu1 %v3655_v0  ;;  %3465 = vmatpush3.msra.mxu0 %v2003_v49 }
 0x3ea   :  { %3508 = vmatpush3.msra.mxu1 %v4645_v15  ;;  %3466 = vmatprep.subr.mxu0 %v3655_v0 }
 0x3eb   :  { %3509 = vmatprep.subr.mxu1 %v3655_v0  ;;  %3467 = vmatpush3.msra.mxu0 %v2010_v50 }
 0x3ec   :  { %3510 = vmatpush3.msra.mxu1 %v4663_v57  ;;  %3468 = vmatprep.subr.mxu0 %v3655_v0 }
 0x3ed   :  { %3511 = vmatprep.subr.mxu1 %v3655_v0  ;;  %3469 = vmatpush3.msra.mxu0 %v2017_v3 }
 0x3ee   :  { %3512 = vmatpush3.msra.mxu1 %v4679_v11  ;;  %3470 = vmatprep.subr.mxu0 %v3655_v0 }
 0x3ef   :  { %3513 = vmatprep.subr.mxu1 %v3655_v0  ;;  %3471 = vmatpush3.msra.mxu0 %v2024_v37 }
 0x3f0   :  { %3514 = vmatpush3.msra.mxu1 %v4690_v40  ;;  %3472 = vmatprep.subr.mxu0 %v3655_v0 }
 0x3f1   :  { %3515 = vmatprep.subr.mxu1 %v3655_v0  ;;  %3473 = vmatpush3.msra.mxu0 %v2031_v1 }
 0x3f2   :  { %3516 = vmatpush3.msra.mxu1 %v4707_v52  ;;  %3474 = vmatprep.subr.mxu0 %v3655_v0 }
 0x3f3   :  { %3517 = vmatprep.subr.mxu1 %v3655_v0  ;;  %3475 = vmatpush3.msra.mxu0 %v2038_v35 }
 0x3f4   :  { %3518 = vmatpush3.msra.mxu1 %v4720_v24  ;;  %3476 = vmatprep.subr.mxu0 %v3655_v0 }
 0x3f5   :  { %3519 = vmatprep.subr.mxu1 %v3655_v0  ;;  %3477 = vmatpush3.msra.mxu0 %v2045_v53 }
 0x3f6   :  { %3520 = vmatpush3.msra.mxu1 %v4738_v39  ;;  %3478 = vmatprep.subr.mxu0 %v3655_v0 }
 0x3f7   :  { %3521 = vmatprep.subr.mxu1 %v3655_v0  ;;  %3479 = vmatpush3.msra.mxu0 %v2052_v10 }
 0x3f8   :  { %3522 = vmatpush3.msra.mxu1 %v4754_v20  ;;  %3480 = vmatprep.subr.mxu0 %v3655_v0 }
 0x3f9   :  { %3523 = vmatprep.subr.mxu1 %v3655_v0  ;;  %3481 = vmatpush3.msra.mxu0 %v2059_v13 }
 0x3fa   :  { %3524 = vmatpush3.msra.mxu1 %v4765_v62  ;;  %3525 = vmatprep.mubr.msk.f32.mxu1 %vm3656_vm0, %v3655_v0 }
 0x3fb   :  { %3482 = vmatprep.subr.mxu0 %v3655_v0  ;;  %3526 = vmatmul.mubr.f32.vlgmr.msra.gmra.mxu1 %v4798_v32 }
 0x3fc   :  { %3483 = vmatpush3.msra.mxu0 %v4993_v6  ;;  %3490 = vmatprep.mubr.msk.f32.mxu0 %vm3656_vm0, %v3655_v0 }
 0x3fd   :  { %3484 = vmatprep.subr.mxu0 %v3655_v0 }
 0x3fe   :  { %3485 = vmatpush3.msra.mxu0 %v4994_v12 }
 0x3ff   :  { %3486 = vmatprep.subr.mxu0 %v3655_v0 }
 0x400   :  { %3487 = vmatpush3.msra.mxu0 %v4995_v16 }
 0x401   :  { %3488 = vmatprep.subr.mxu0 %v3655_v0 }
 0x402   :  { %3489 = vmatpush3.msra.mxu0 %v4996_v18 }
 0x403   :  { %3491 = vmatmul.mubr.f32.vlgmr.msra.gmra.mxu0 %v4798_v32 }
 0x404   :  { %3613 = shalt.err (!%p3610_p5)
}
 0x405   :  { %2553 = dma.vmem_to_hbm [thread:$0]  %s2551_s23, 128, %s4980_s11, [#allocation10]   ;;  %v2567_v30 = vld [vmem:[%s4978_s9] ss:$0 sm:$0xff] }
 0x406   :  { %s3659_s11 = smov [#allocation8]  }
 0x407   :  { %s2540_s28 = sshll.u32 %s3659_s11, 4  ;;  %s2541_s28 = int_to_ptr.vmem [resolvable:$true] %s2540_s28 }
 0x408   :  { %s3622_s9 = scalar_lea.vmem %s2541_s28, 128  ;;  %p3627_p7 = scmp.lt.s32.totalorder %s2541_s28, %s2541_s28 }
 0x409   :  { %p3623_p6 = scmp.ne.s32.totalorder %s2541_s28, %s3622_s9  ;;  %p3628_p8 = scmp.lt.s32.totalorder %s3622_s9, %s3622_s9 }
 0x40b   :  { %p3629_p9 = por %p3628_p8, %p3627_p7 }
 0x40d   :  { %p3630_p10 = pnand %p3629_p9, %p3623_p6 }
 0x479   :  { %v2126_v0 = vpop.f32.mrf.mxu1 }
 0x47b   :  { %v3387_v22 = vpop.f32.mrf.mxu1 }
 0x481   :  { %v1975_v23 = vpop.f32.mrf.mxu0 }
 0x482   :  { %v1976_v49 = vadd.f32 %v2567_v30, %v1975_v23 }
 0x483   :  { %v3352_v28 = vpop.f32.mrf.mxu0 }
 0x484   :  { %v2127_v19 = vadd.f32 %v2126_v0, %v1976_v49 }
 0x499   :  { %v2319_v58 = vpop.f32.mrf.mxu1 }
 0x49b   :  { %v3457_v61 = vpop.f32.mrf.mxu1 }
 0x4a2   :  { %v2230_v14 = vpop.f32.mrf.mxu0 }
 0x4a3   :  { %v2231_v44 = vadd.f32 %v2230_v14, %v2127_v19 }
 0x4a4   :  { %v3422_v26 = vpop.f32.mrf.mxu0 }
 0x4a5   :  { %v2320_v50 = vadd.f32 %v2319_v58, %v2231_v44 }
 0x4bb   :  { %v2525_v51 = vpop.f32.mrf.mxu1 }
 0x4bd   :  { %v3527_v43 = vpop.f32.mrf.mxu1 }
 0x4c3   :  { %v2438_v3 = vpop.f32.mrf.mxu0 }
 0x4c4   :  { %v2439_v7 = vadd.f32 %v2438_v3, %v2320_v50 }
 0x4c5   :  { %v3492_v15 = vpop.f32.mrf.mxu0 }
 0x4c6   :  { %v2526_v37 = vadd.f32 %v2525_v51, %v2439_v7 }
 0x4c8   :  { %v2529_v25 = vmul.f32 0.5, %v2526_v37 }
 0x4ca   :  { %3540 = vtanh.f32 %v2529_v25 }
 0x4d7   :  { %v3541_v57 = vpop.eup %3540 }
 0x4d8   :  { %v2531_v1 = vadd.f32 1.0, %v3541_v57 }
 0x4da   :  { %v2532_v4 = vmul.f32 0.5, %v2531_v1 }
 0x4dc   :  { %2533 = vst.msk [vmem:[#allocation8] sm:$0xff] %vm92_vm1, %v2532_v4 }
 0x4dd   :  { %3633 = shalt.err (!%p3630_p10)
}
 0x4de   :  { %2543 = dma.vmem_to_hbm [thread:$0]  %s2541_s28, 128, %s4979_s10, [#allocation4]  }
 0x4df   :  { %3646 = dma.done.wait [#allocation4], 128  }
 0x4e0   :  { %3647 = vsyncadd [#allocation4], 4294967168 }
 0x4e1   :  { %3648 = dma.done.wait [#allocation10], 128  }
 0x4e2   :  { %3649 = vsyncadd [#allocation10], 4294967168 }
 0x4e3   :  { %2560 = vsyncpa [#allocation3], 1 }
 0x4e4   :  { %2561 = vsyncpa [#allocation6], 1 }
 0x4e5   :  { %2562 = vsyncpa [#allocation4], 1 }
 0x4e6   :  { %2563 = vsyncpa [#allocation10], 1 }

</bundles_post_ra>
